<compile_context>
chip_gen: v6e
topology: v6e:2x2x1
jax: 0.10.0
libtpu: 0.0.40
codegen_flags: <defaults>
</compile_context>

<pallas_src>
import jax
import jax.numpy as jnp
from jax import lax
from jax.experimental import pallas as pl
from jax.experimental.pallas import tpu as pltpu
import numpy as np


def lstm_kernel(x_ref, wih0_ref, whh0_ref, b0_ref,
                wih1_ref, whh1_ref, b1_ref,
                wout_ref, bout_ref,
                out_ref):
    # x_ref:    (T*B, I)   inputs, time-major rows (row t*B + b)
    # wih0_ref: (I, 4H)    layer-0 input weights (transposed torch weight_ih_l0)
    # whh0_ref: (H, 4H)    layer-0 recurrent weights
    # b0_ref:   (1, 4H)    b_ih_l0 + b_hh_l0
    # wih1/whh1/b1: layer-1 analogues (layer-1 input is layer-0 hidden, so K = H)
    # wout_ref: (1, H)     output Linear weight as a row
    # bout_ref: (1, 1)     output Linear bias
    # out_ref:  (T, B)     projected outputs (unit dim added by the wrapper)
    T, B = out_ref.shape
    H = whh0_ref.shape[0]
    G = 4 * H

    wih0 = wih0_ref[...]
    whh0 = whh0_ref[...]
    wih1 = wih1_ref[...]
    whh1 = whh1_ref[...]

    # --- Hoisted layer-0 input projection (single MXU matmul, bias folded in) ---
    xw0 = jnp.dot(x_ref[...], wih0, preferred_element_type=jnp.float32) + b0_ref[...]  # (T*B, 4H)

    # --- Hoisted layer-1 bias broadcast (done once, not once per unrolled step) ---
    b1b = jnp.broadcast_to(b1_ref[...], (B, G))

    def lstm_activations(gates, c_prev):
        # PyTorch gate order: i, f, g, o
        i_g = jax.nn.sigmoid(gates[:, 0 * H:1 * H])
        f_g = jax.nn.sigmoid(gates[:, 1 * H:2 * H])
        g_g = jnp.tanh(gates[:, 2 * H:3 * H])
        o_g = jax.nn.sigmoid(gates[:, 3 * H:4 * H])
        c_new = f_g * c_prev + i_g * g_g
        h_new = o_g * jnp.tanh(c_new)
        return h_new, c_new

    zeros = jnp.zeros((B, H), jnp.float32)
    h0, c0, h1, c1 = zeros, zeros, zeros, zeros
    h1_hist = []

    # Fully unrolled time recurrence (T is static).  Only the two h @ whh matmuls
    # and h0_new @ wih1 remain inside the serial chain.
    for t in range(T):
        gates0 = xw0[t * B:(t + 1) * B, :] + jnp.dot(
            h0, whh0, preferred_element_type=jnp.float32)
        h0, c0 = lstm_activations(gates0, c0)

        gates1 = (jnp.dot(h0, wih1, preferred_element_type=jnp.float32)
                  + jnp.dot(h1, whh1, preferred_element_type=jnp.float32)
                  + b1b)
        h1, c1 = lstm_activations(gates1, c1)
        h1_hist.append(h1)

    # --- Final Linear(H -> 1) over all (T*B) hidden states, kept in registers ---
    h_all = jnp.stack(h1_hist, axis=0)                 # (T, B, H), never touches VMEM scratch
    w_row = wout_ref[...].reshape(1, 1, H)             # (1, 1, H)
    proj = jnp.sum(h_all * w_row, axis=-1)             # (T, B): VPU mul + lane reduce
    out_ref[...] = proj + bout_ref[...]                # single (T, B) store, bias broadcast


def lstm_model_forward(x, params):
    """x: (T, B, I) float32 -> (T, B, 1) float32, matching LstmModel.forward."""
    T, B, I = x.shape
    H = params["whh0"].shape[0]

    x2d = x.reshape(T * B, I)                          # time-major rows, done wrapper-side
    wout_row = params["wout"].reshape(1, H)            # (H, 1) -> (1, H), outside the kernel

    inputs = (x2d,
              params["wih0"], params["whh0"], params["b0"],
              params["wih1"], params["whh1"], params["b1"],
              wout_row, params["bout"])

    vmem_spec = pl.BlockSpec(memory_space=pltpu.MemorySpace.VMEM)

    out2d = pl.pallas_call(
        lstm_kernel,
        out_shape=jax.ShapeDtypeStruct((T, B), jnp.float32),
        in_specs=[vmem_spec for _ in inputs],
        out_specs=vmem_spec,
    )(*inputs)

    return out2d[..., None]                            # (T, B, 1)


def make_params(key, input_size=5, hidden_size=6):
    """Deterministic init mirroring nn.LSTM / nn.Linear default U(-1/sqrt(H), 1/sqrt(H))."""
    H, I = hidden_size, input_size
    k = 1.0 / np.sqrt(H)
    keys = jax.random.split(key, 10)

    def u(kk, shape, bound):
        return jax.random.uniform(kk, shape, jnp.float32, -bound, bound)

    params = {
        # layer 0: torch weight_ih_l0 is (4H, I); stored transposed (I, 4H)
        "wih0": u(keys[0], (I, 4 * H), k),
        "whh0": u(keys[1], (H, 4 * H), k),
        "b0": (u(keys[2], (4 * H,), k) + u(keys[3], (4 * H,), k)).reshape(1, 4 * H),
        # layer 1: input is previous layer's hidden state (H)
        "wih1": u(keys[4], (H, 4 * H), k),
        "whh1": u(keys[5], (H, 4 * H), k),
        "b1": (u(keys[6], (4 * H,), k) + u(keys[7], (4 * H,), k)).reshape(1, 4 * H),
        # output Linear(6 -> 1): torch weight (1, H); stored transposed (H, 1)
        "wout": u(keys[8], (H, 1), 1.0 / np.sqrt(H)),
        "bout": u(keys[9], (1, 1), 1.0 / np.sqrt(H)),
    }
    return params


def lstm_model_ref(x, params):
    """Pure-JAX reference of the PyTorch forward (for validation)."""
    T, B, I = x.shape
    H = params["whh0"].shape[0]

    def cell(x_t, h, c, wih, whh, b):
        g = x_t @ wih + h @ whh + b
        i = jax.nn.sigmoid(g[:, :H])
        f = jax.nn.sigmoid(g[:, H:2 * H])
        gg = jnp.tanh(g[:, 2 * H:3 * H])
        o = jax.nn.sigmoid(g[:, 3 * H:])
        c = f * c + i * gg
        h = o * jnp.tanh(c)
        return h, c

    def step(carry, x_t):
        h0, c0, h1, c1 = carry
        h0, c0 = cell(x_t, h0, c0, params["wih0"], params["whh0"], params["b0"])
        h1, c1 = cell(h0, h1, c1, params["wih1"], params["whh1"], params["b1"])
        return (h0, c0, h1, c1), h1

    z = jnp.zeros((B, H), jnp.float32)
    _, hs = lax.scan(step, (z, z, z, z), x)            # hs: (T, B, H)
    return hs @ params["wout"] + params["bout"]        # (T, B, 1)


if __name__ == "__main__":
    key = jax.random.PRNGKey(0)
    k_x, k_p = jax.random.split(key)

    SEQ, BATCH, INPUT, HIDDEN = 8, 2, 5, 6
    x = jax.random.normal(k_x, (SEQ, BATCH, INPUT), jnp.float32)
    params = make_params(k_p, input_size=INPUT, hidden_size=HIDDEN)

    out = lstm_model_forward(x, params)
    out = jax.block_until_ready(out)

    ref = jax.block_until_ready(lstm_model_ref(x, params))
    assert out.shape == (SEQ, BATCH, 1), out.shape
    np.testing.assert_allclose(np.asarray(out), np.asarray(ref), rtol=1e-5, atol=1e-5)

    print("KERNEL_OK")
</pallas_src>

<mosaic_0001>
module attributes {stable_mosaic.version = 11 : i64} {
  func.func @lstm_kernel(%arg0: memref<16x5xf32, #tpu.memory_space<vmem>>, %arg1: memref<5x24xf32, #tpu.memory_space<vmem>>, %arg2: memref<6x24xf32, #tpu.memory_space<vmem>>, %arg3: memref<1x24xf32, #tpu.memory_space<vmem>>, %arg4: memref<6x24xf32, #tpu.memory_space<vmem>>, %arg5: memref<6x24xf32, #tpu.memory_space<vmem>>, %arg6: memref<1x24xf32, #tpu.memory_space<vmem>>, %arg7: memref<1x6xf32, #tpu.memory_space<vmem>>, %arg8: memref<1x1xf32, #tpu.memory_space<vmem>>, %arg9: memref<8x2xf32, #tpu.memory_space<vmem>>) attributes {dimension_semantics = [], scalar_prefetch = 0 : i64, scratch_operands = 0 : i64, tpu.core_type = #tpu.core_type<tc>} {
    %c0 = arith.constant 0 : index
    %c0_0 = arith.constant 0 : index
    %0 = vector.load %arg1[%c0, %c0_0] : memref<5x24xf32, #tpu.memory_space<vmem>>, vector<5x24xf32>
    %c0_1 = arith.constant 0 : index
    %c0_2 = arith.constant 0 : index
    %1 = vector.load %arg2[%c0_1, %c0_2] : memref<6x24xf32, #tpu.memory_space<vmem>>, vector<6x24xf32>
    %c0_3 = arith.constant 0 : index
    %c0_4 = arith.constant 0 : index
    %2 = vector.load %arg4[%c0_3, %c0_4] : memref<6x24xf32, #tpu.memory_space<vmem>>, vector<6x24xf32>
    %c0_5 = arith.constant 0 : index
    %c0_6 = arith.constant 0 : index
    %3 = vector.load %arg5[%c0_5, %c0_6] : memref<6x24xf32, #tpu.memory_space<vmem>>, vector<6x24xf32>
    %c0_7 = arith.constant 0 : index
    %c0_8 = arith.constant 0 : index
    %4 = vector.load %arg0[%c0_7, %c0_8] : memref<16x5xf32, #tpu.memory_space<vmem>>, vector<16x5xf32>
    %cst = arith.constant dense<0.000000e+00> : vector<16x24xf32>
    %5 = tpu.matmul %4, %0, %cst {dimension_numbers = #tpu.dot_dimension_numbers<[1], [0], [0], [1], [0, 0, 1, 1], [], []>} : vector<16x5xf32>, vector<5x24xf32>, vector<16x24xf32> -> vector<16x24xf32>
    %c0_9 = arith.constant 0 : index
    %c0_10 = arith.constant 0 : index
    %6 = vector.load %arg3[%c0_9, %c0_10] : memref<1x24xf32, #tpu.memory_space<vmem>>, vector<1x24xf32>
    %7 = vector.broadcast %6 : vector<1x24xf32> to vector<16x24xf32>
    %8 = arith.addf %5, %7 : vector<16x24xf32>
    %c0_11 = arith.constant 0 : index
    %c0_12 = arith.constant 0 : index
    %9 = vector.load %arg6[%c0_11, %c0_12] : memref<1x24xf32, #tpu.memory_space<vmem>>, vector<1x24xf32>
    %10 = vector.shape_cast %9 : vector<1x24xf32> to vector<1x24xf32>
    %11 = vector.broadcast %10 : vector<1x24xf32> to vector<2x24xf32>
    %cst_13 = arith.constant 0.000000e+00 : f32
    %12 = vector.broadcast %cst_13 : f32 to vector<2x6xf32>
    %13 = vector.extract_strided_slice %8 {offsets = [0, 0], sizes = [2, 24], strides = [1, 1]} : vector<16x24xf32> to vector<2x24xf32>
    %cst_14 = arith.constant dense<0.000000e+00> : vector<2x24xf32>
    %14 = tpu.matmul %12, %1, %cst_14 {dimension_numbers = #tpu.dot_dimension_numbers<[1], [0], [0], [1], [0, 0, 1, 1], [], []>} : vector<2x6xf32>, vector<6x24xf32>, vector<2x24xf32> -> vector<2x24xf32>
    %15 = arith.addf %13, %14 : vector<2x24xf32>
    %16 = vector.extract_strided_slice %15 {offsets = [0, 0], sizes = [2, 6], strides = [1, 1]} : vector<2x24xf32> to vector<2x6xf32>
    %17 = arith.negf %16 : vector<2x6xf32>
    %18 = math.exp %17 : vector<2x6xf32>
    %cst_15 = arith.constant 1.000000e+00 : f32
    %19 = vector.broadcast %cst_15 : f32 to vector<2x6xf32>
    %20 = arith.addf %19, %18 : vector<2x6xf32>
    %21 = arith.divf %19, %20 : vector<2x6xf32>
    %22 = vector.extract_strided_slice %15 {offsets = [0, 6], sizes = [2, 6], strides = [1, 1]} : vector<2x24xf32> to vector<2x6xf32>
    %23 = arith.negf %22 : vector<2x6xf32>
    %24 = math.exp %23 : vector<2x6xf32>
    %cst_16 = arith.constant 1.000000e+00 : f32
    %25 = vector.broadcast %cst_16 : f32 to vector<2x6xf32>
    %26 = arith.addf %25, %24 : vector<2x6xf32>
    %27 = arith.divf %25, %26 : vector<2x6xf32>
    %28 = vector.extract_strided_slice %15 {offsets = [0, 12], sizes = [2, 6], strides = [1, 1]} : vector<2x24xf32> to vector<2x6xf32>
    %29 = math.tanh %28 : vector<2x6xf32>
    %30 = vector.extract_strided_slice %15 {offsets = [0, 18], sizes = [2, 6], strides = [1, 1]} : vector<2x24xf32> to vector<2x6xf32>
    %31 = arith.negf %30 : vector<2x6xf32>
    %32 = math.exp %31 : vector<2x6xf32>
    %cst_17 = arith.constant 1.000000e+00 : f32
    %33 = vector.broadcast %cst_17 : f32 to vector<2x6xf32>
    %34 = arith.addf %33, %32 : vector<2x6xf32>
    %35 = arith.divf %33, %34 : vector<2x6xf32>
    %36 = arith.mulf %27, %12 : vector<2x6xf32>
    %37 = arith.mulf %21, %29 : vector<2x6xf32>
    %38 = arith.addf %36, %37 : vector<2x6xf32>
    %39 = math.tanh %38 : vector<2x6xf32>
    %40 = arith.mulf %35, %39 : vector<2x6xf32>
    %cst_18 = arith.constant dense<0.000000e+00> : vector<2x24xf32>
    %41 = tpu.matmul %40, %2, %cst_18 {dimension_numbers = #tpu.dot_dimension_numbers<[1], [0], [0], [1], [0, 0, 1, 1], [], []>} : vector<2x6xf32>, vector<6x24xf32>, vector<2x24xf32> -> vector<2x24xf32>
    %cst_19 = arith.constant dense<0.000000e+00> : vector<2x24xf32>
    %42 = tpu.matmul %12, %3, %cst_19 {dimension_numbers = #tpu.dot_dimension_numbers<[1], [0], [0], [1], [0, 0, 1, 1], [], []>} : vector<2x6xf32>, vector<6x24xf32>, vector<2x24xf32> -> vector<2x24xf32>
    %43 = arith.addf %41, %42 : vector<2x24xf32>
    %44 = arith.addf %43, %11 : vector<2x24xf32>
    %45 = vector.extract_strided_slice %44 {offsets = [0, 0], sizes = [2, 6], strides = [1, 1]} : vector<2x24xf32> to vector<2x6xf32>
    %46 = arith.negf %45 : vector<2x6xf32>
    %47 = math.exp %46 : vector<2x6xf32>
    %cst_20 = arith.constant 1.000000e+00 : f32
    %48 = vector.broadcast %cst_20 : f32 to vector<2x6xf32>
    %49 = arith.addf %48, %47 : vector<2x6xf32>
    %50 = arith.divf %48, %49 : vector<2x6xf32>
    %51 = vector.extract_strided_slice %44 {offsets = [0, 6], sizes = [2, 6], strides = [1, 1]} : vector<2x24xf32> to vector<2x6xf32>
    %52 = arith.negf %51 : vector<2x6xf32>
    %53 = math.exp %52 : vector<2x6xf32>
    %cst_21 = arith.constant 1.000000e+00 : f32
    %54 = vector.broadcast %cst_21 : f32 to vector<2x6xf32>
    %55 = arith.addf %54, %53 : vector<2x6xf32>
    %56 = arith.divf %54, %55 : vector<2x6xf32>
    %57 = vector.extract_strided_slice %44 {offsets = [0, 12], sizes = [2, 6], strides = [1, 1]} : vector<2x24xf32> to vector<2x6xf32>
    %58 = math.tanh %57 : vector<2x6xf32>
    %59 = vector.extract_strided_slice %44 {offsets = [0, 18], sizes = [2, 6], strides = [1, 1]} : vector<2x24xf32> to vector<2x6xf32>
    %60 = arith.negf %59 : vector<2x6xf32>
    %61 = math.exp %60 : vector<2x6xf32>
    %cst_22 = arith.constant 1.000000e+00 : f32
    %62 = vector.broadcast %cst_22 : f32 to vector<2x6xf32>
    %63 = arith.addf %62, %61 : vector<2x6xf32>
    %64 = arith.divf %62, %63 : vector<2x6xf32>
    %65 = arith.mulf %56, %12 : vector<2x6xf32>
    %66 = arith.mulf %50, %58 : vector<2x6xf32>
    %67 = arith.addf %65, %66 : vector<2x6xf32>
    %68 = math.tanh %67 : vector<2x6xf32>
    %69 = arith.mulf %64, %68 : vector<2x6xf32>
    %70 = vector.extract_strided_slice %8 {offsets = [2, 0], sizes = [2, 24], strides = [1, 1]} : vector<16x24xf32> to vector<2x24xf32>
    %cst_23 = arith.constant dense<0.000000e+00> : vector<2x24xf32>
    %71 = tpu.matmul %40, %1, %cst_23 {dimension_numbers = #tpu.dot_dimension_numbers<[1], [0], [0], [1], [0, 0, 1, 1], [], []>} : vector<2x6xf32>, vector<6x24xf32>, vector<2x24xf32> -> vector<2x24xf32>
    %72 = arith.addf %70, %71 : vector<2x24xf32>
    %73 = vector.extract_strided_slice %72 {offsets = [0, 0], sizes = [2, 6], strides = [1, 1]} : vector<2x24xf32> to vector<2x6xf32>
    %74 = arith.negf %73 : vector<2x6xf32>
    %75 = math.exp %74 : vector<2x6xf32>
    %cst_24 = arith.constant 1.000000e+00 : f32
    %76 = vector.broadcast %cst_24 : f32 to vector<2x6xf32>
    %77 = arith.addf %76, %75 : vector<2x6xf32>
    %78 = arith.divf %76, %77 : vector<2x6xf32>
    %79 = vector.extract_strided_slice %72 {offsets = [0, 6], sizes = [2, 6], strides = [1, 1]} : vector<2x24xf32> to vector<2x6xf32>
    %80 = arith.negf %79 : vector<2x6xf32>
    %81 = math.exp %80 : vector<2x6xf32>
    %cst_25 = arith.constant 1.000000e+00 : f32
    %82 = vector.broadcast %cst_25 : f32 to vector<2x6xf32>
    %83 = arith.addf %82, %81 : vector<2x6xf32>
    %84 = arith.divf %82, %83 : vector<2x6xf32>
    %85 = vector.extract_strided_slice %72 {offsets = [0, 12], sizes = [2, 6], strides = [1, 1]} : vector<2x24xf32> to vector<2x6xf32>
    %86 = math.tanh %85 : vector<2x6xf32>
    %87 = vector.extract_strided_slice %72 {offsets = [0, 18], sizes = [2, 6], strides = [1, 1]} : vector<2x24xf32> to vector<2x6xf32>
    %88 = arith.negf %87 : vector<2x6xf32>
    %89 = math.exp %88 : vector<2x6xf32>
    %cst_26 = arith.constant 1.000000e+00 : f32
    %90 = vector.broadcast %cst_26 : f32 to vector<2x6xf32>
    %91 = arith.addf %90, %89 : vector<2x6xf32>
    %92 = arith.divf %90, %91 : vector<2x6xf32>
    %93 = arith.mulf %84, %38 : vector<2x6xf32>
    %94 = arith.mulf %78, %86 : vector<2x6xf32>
    %95 = arith.addf %93, %94 : vector<2x6xf32>
    %96 = math.tanh %95 : vector<2x6xf32>
    %97 = arith.mulf %92, %96 : vector<2x6xf32>
    %cst_27 = arith.constant dense<0.000000e+00> : vector<2x24xf32>
    %98 = tpu.matmul %97, %2, %cst_27 {dimension_numbers = #tpu.dot_dimension_numbers<[1], [0], [0], [1], [0, 0, 1, 1], [], []>} : vector<2x6xf32>, vector<6x24xf32>, vector<2x24xf32> -> vector<2x24xf32>
    %cst_28 = arith.constant dense<0.000000e+00> : vector<2x24xf32>
    %99 = tpu.matmul %69, %3, %cst_28 {dimension_numbers = #tpu.dot_dimension_numbers<[1], [0], [0], [1], [0, 0, 1, 1], [], []>} : vector<2x6xf32>, vector<6x24xf32>, vector<2x24xf32> -> vector<2x24xf32>
    %100 = arith.addf %98, %99 : vector<2x24xf32>
    %101 = arith.addf %100, %11 : vector<2x24xf32>
    %102 = vector.extract_strided_slice %101 {offsets = [0, 0], sizes = [2, 6], strides = [1, 1]} : vector<2x24xf32> to vector<2x6xf32>
    %103 = arith.negf %102 : vector<2x6xf32>
    %104 = math.exp %103 : vector<2x6xf32>
    %cst_29 = arith.constant 1.000000e+00 : f32
    %105 = vector.broadcast %cst_29 : f32 to vector<2x6xf32>
    %106 = arith.addf %105, %104 : vector<2x6xf32>
    %107 = arith.divf %105, %106 : vector<2x6xf32>
    %108 = vector.extract_strided_slice %101 {offsets = [0, 6], sizes = [2, 6], strides = [1, 1]} : vector<2x24xf32> to vector<2x6xf32>
    %109 = arith.negf %108 : vector<2x6xf32>
    %110 = math.exp %109 : vector<2x6xf32>
    %cst_30 = arith.constant 1.000000e+00 : f32
    %111 = vector.broadcast %cst_30 : f32 to vector<2x6xf32>
    %112 = arith.addf %111, %110 : vector<2x6xf32>
    %113 = arith.divf %111, %112 : vector<2x6xf32>
    %114 = vector.extract_strided_slice %101 {offsets = [0, 12], sizes = [2, 6], strides = [1, 1]} : vector<2x24xf32> to vector<2x6xf32>
    %115 = math.tanh %114 : vector<2x6xf32>
    %116 = vector.extract_strided_slice %101 {offsets = [0, 18], sizes = [2, 6], strides = [1, 1]} : vector<2x24xf32> to vector<2x6xf32>
    %117 = arith.negf %116 : vector<2x6xf32>
    %118 = math.exp %117 : vector<2x6xf32>
    %cst_31 = arith.constant 1.000000e+00 : f32
    %119 = vector.broadcast %cst_31 : f32 to vector<2x6xf32>
    %120 = arith.addf %119, %118 : vector<2x6xf32>
    %121 = arith.divf %119, %120 : vector<2x6xf32>
    %122 = arith.mulf %113, %67 : vector<2x6xf32>
    %123 = arith.mulf %107, %115 : vector<2x6xf32>
    %124 = arith.addf %122, %123 : vector<2x6xf32>
    %125 = math.tanh %124 : vector<2x6xf32>
    %126 = arith.mulf %121, %125 : vector<2x6xf32>
    %127 = vector.extract_strided_slice %8 {offsets = [4, 0], sizes = [2, 24], strides = [1, 1]} : vector<16x24xf32> to vector<2x24xf32>
    %cst_32 = arith.constant dense<0.000000e+00> : vector<2x24xf32>
    %128 = tpu.matmul %97, %1, %cst_32 {dimension_numbers = #tpu.dot_dimension_numbers<[1], [0], [0], [1], [0, 0, 1, 1], [], []>} : vector<2x6xf32>, vector<6x24xf32>, vector<2x24xf32> -> vector<2x24xf32>
    %129 = arith.addf %127, %128 : vector<2x24xf32>
    %130 = vector.extract_strided_slice %129 {offsets = [0, 0], sizes = [2, 6], strides = [1, 1]} : vector<2x24xf32> to vector<2x6xf32>
    %131 = arith.negf %130 : vector<2x6xf32>
    %132 = math.exp %131 : vector<2x6xf32>
    %cst_33 = arith.constant 1.000000e+00 : f32
    %133 = vector.broadcast %cst_33 : f32 to vector<2x6xf32>
    %134 = arith.addf %133, %132 : vector<2x6xf32>
    %135 = arith.divf %133, %134 : vector<2x6xf32>
    %136 = vector.extract_strided_slice %129 {offsets = [0, 6], sizes = [2, 6], strides = [1, 1]} : vector<2x24xf32> to vector<2x6xf32>
    %137 = arith.negf %136 : vector<2x6xf32>
    %138 = math.exp %137 : vector<2x6xf32>
    %cst_34 = arith.constant 1.000000e+00 : f32
    %139 = vector.broadcast %cst_34 : f32 to vector<2x6xf32>
    %140 = arith.addf %139, %138 : vector<2x6xf32>
    %141 = arith.divf %139, %140 : vector<2x6xf32>
    %142 = vector.extract_strided_slice %129 {offsets = [0, 12], sizes = [2, 6], strides = [1, 1]} : vector<2x24xf32> to vector<2x6xf32>
    %143 = math.tanh %142 : vector<2x6xf32>
    %144 = vector.extract_strided_slice %129 {offsets = [0, 18], sizes = [2, 6], strides = [1, 1]} : vector<2x24xf32> to vector<2x6xf32>
    %145 = arith.negf %144 : vector<2x6xf32>
    %146 = math.exp %145 : vector<2x6xf32>
    %cst_35 = arith.constant 1.000000e+00 : f32
    %147 = vector.broadcast %cst_35 : f32 to vector<2x6xf32>
    %148 = arith.addf %147, %146 : vector<2x6xf32>
    %149 = arith.divf %147, %148 : vector<2x6xf32>
    %150 = arith.mulf %141, %95 : vector<2x6xf32>
    %151 = arith.mulf %135, %143 : vector<2x6xf32>
    %152 = arith.addf %150, %151 : vector<2x6xf32>
    %153 = math.tanh %152 : vector<2x6xf32>
    %154 = arith.mulf %149, %153 : vector<2x6xf32>
    %cst_36 = arith.constant dense<0.000000e+00> : vector<2x24xf32>
    %155 = tpu.matmul %154, %2, %cst_36 {dimension_numbers = #tpu.dot_dimension_numbers<[1], [0], [0], [1], [0, 0, 1, 1], [], []>} : vector<2x6xf32>, vector<6x24xf32>, vector<2x24xf32> -> vector<2x24xf32>
    %cst_37 = arith.constant dense<0.000000e+00> : vector<2x24xf32>
    %156 = tpu.matmul %126, %3, %cst_37 {dimension_numbers = #tpu.dot_dimension_numbers<[1], [0], [0], [1], [0, 0, 1, 1], [], []>} : vector<2x6xf32>, vector<6x24xf32>, vector<2x24xf32> -> vector<2x24xf32>
    %157 = arith.addf %155, %156 : vector<2x24xf32>
    %158 = arith.addf %157, %11 : vector<2x24xf32>
    %159 = vector.extract_strided_slice %158 {offsets = [0, 0], sizes = [2, 6], strides = [1, 1]} : vector<2x24xf32> to vector<2x6xf32>
    %160 = arith.negf %159 : vector<2x6xf32>
    %161 = math.exp %160 : vector<2x6xf32>
    %cst_38 = arith.constant 1.000000e+00 : f32
    %162 = vector.broadcast %cst_38 : f32 to vector<2x6xf32>
    %163 = arith.addf %162, %161 : vector<2x6xf32>
    %164 = arith.divf %162, %163 : vector<2x6xf32>
    %165 = vector.extract_strided_slice %158 {offsets = [0, 6], sizes = [2, 6], strides = [1, 1]} : vector<2x24xf32> to vector<2x6xf32>
    %166 = arith.negf %165 : vector<2x6xf32>
    %167 = math.exp %166 : vector<2x6xf32>
    %cst_39 = arith.constant 1.000000e+00 : f32
    %168 = vector.broadcast %cst_39 : f32 to vector<2x6xf32>
    %169 = arith.addf %168, %167 : vector<2x6xf32>
    %170 = arith.divf %168, %169 : vector<2x6xf32>
    %171 = vector.extract_strided_slice %158 {offsets = [0, 12], sizes = [2, 6], strides = [1, 1]} : vector<2x24xf32> to vector<2x6xf32>
    %172 = math.tanh %171 : vector<2x6xf32>
    %173 = vector.extract_strided_slice %158 {offsets = [0, 18], sizes = [2, 6], strides = [1, 1]} : vector<2x24xf32> to vector<2x6xf32>
    %174 = arith.negf %173 : vector<2x6xf32>
    %175 = math.exp %174 : vector<2x6xf32>
    %cst_40 = arith.constant 1.000000e+00 : f32
    %176 = vector.broadcast %cst_40 : f32 to vector<2x6xf32>
    %177 = arith.addf %176, %175 : vector<2x6xf32>
    %178 = arith.divf %176, %177 : vector<2x6xf32>
    %179 = arith.mulf %170, %124 : vector<2x6xf32>
    %180 = arith.mulf %164, %172 : vector<2x6xf32>
    %181 = arith.addf %179, %180 : vector<2x6xf32>
    %182 = math.tanh %181 : vector<2x6xf32>
    %183 = arith.mulf %178, %182 : vector<2x6xf32>
    %184 = vector.extract_strided_slice %8 {offsets = [6, 0], sizes = [2, 24], strides = [1, 1]} : vector<16x24xf32> to vector<2x24xf32>
    %cst_41 = arith.constant dense<0.000000e+00> : vector<2x24xf32>
    %185 = tpu.matmul %154, %1, %cst_41 {dimension_numbers = #tpu.dot_dimension_numbers<[1], [0], [0], [1], [0, 0, 1, 1], [], []>} : vector<2x6xf32>, vector<6x24xf32>, vector<2x24xf32> -> vector<2x24xf32>
    %186 = arith.addf %184, %185 : vector<2x24xf32>
    %187 = vector.extract_strided_slice %186 {offsets = [0, 0], sizes = [2, 6], strides = [1, 1]} : vector<2x24xf32> to vector<2x6xf32>
    %188 = arith.negf %187 : vector<2x6xf32>
    %189 = math.exp %188 : vector<2x6xf32>
    %cst_42 = arith.constant 1.000000e+00 : f32
    %190 = vector.broadcast %cst_42 : f32 to vector<2x6xf32>
    %191 = arith.addf %190, %189 : vector<2x6xf32>
    %192 = arith.divf %190, %191 : vector<2x6xf32>
    %193 = vector.extract_strided_slice %186 {offsets = [0, 6], sizes = [2, 6], strides = [1, 1]} : vector<2x24xf32> to vector<2x6xf32>
    %194 = arith.negf %193 : vector<2x6xf32>
    %195 = math.exp %194 : vector<2x6xf32>
    %cst_43 = arith.constant 1.000000e+00 : f32
    %196 = vector.broadcast %cst_43 : f32 to vector<2x6xf32>
    %197 = arith.addf %196, %195 : vector<2x6xf32>
    %198 = arith.divf %196, %197 : vector<2x6xf32>
    %199 = vector.extract_strided_slice %186 {offsets = [0, 12], sizes = [2, 6], strides = [1, 1]} : vector<2x24xf32> to vector<2x6xf32>
    %200 = math.tanh %199 : vector<2x6xf32>
    %201 = vector.extract_strided_slice %186 {offsets = [0, 18], sizes = [2, 6], strides = [1, 1]} : vector<2x24xf32> to vector<2x6xf32>
    %202 = arith.negf %201 : vector<2x6xf32>
    %203 = math.exp %202 : vector<2x6xf32>
    %cst_44 = arith.constant 1.000000e+00 : f32
    %204 = vector.broadcast %cst_44 : f32 to vector<2x6xf32>
    %205 = arith.addf %204, %203 : vector<2x6xf32>
    %206 = arith.divf %204, %205 : vector<2x6xf32>
    %207 = arith.mulf %198, %152 : vector<2x6xf32>
    %208 = arith.mulf %192, %200 : vector<2x6xf32>
    %209 = arith.addf %207, %208 : vector<2x6xf32>
    %210 = math.tanh %209 : vector<2x6xf32>
    %211 = arith.mulf %206, %210 : vector<2x6xf32>
    %cst_45 = arith.constant dense<0.000000e+00> : vector<2x24xf32>
    %212 = tpu.matmul %211, %2, %cst_45 {dimension_numbers = #tpu.dot_dimension_numbers<[1], [0], [0], [1], [0, 0, 1, 1], [], []>} : vector<2x6xf32>, vector<6x24xf32>, vector<2x24xf32> -> vector<2x24xf32>
    %cst_46 = arith.constant dense<0.000000e+00> : vector<2x24xf32>
    %213 = tpu.matmul %183, %3, %cst_46 {dimension_numbers = #tpu.dot_dimension_numbers<[1], [0], [0], [1], [0, 0, 1, 1], [], []>} : vector<2x6xf32>, vector<6x24xf32>, vector<2x24xf32> -> vector<2x24xf32>
    %214 = arith.addf %212, %213 : vector<2x24xf32>
    %215 = arith.addf %214, %11 : vector<2x24xf32>
    %216 = vector.extract_strided_slice %215 {offsets = [0, 0], sizes = [2, 6], strides = [1, 1]} : vector<2x24xf32> to vector<2x6xf32>
    %217 = arith.negf %216 : vector<2x6xf32>
    %218 = math.exp %217 : vector<2x6xf32>
    %cst_47 = arith.constant 1.000000e+00 : f32
    %219 = vector.broadcast %cst_47 : f32 to vector<2x6xf32>
    %220 = arith.addf %219, %218 : vector<2x6xf32>
    %221 = arith.divf %219, %220 : vector<2x6xf32>
    %222 = vector.extract_strided_slice %215 {offsets = [0, 6], sizes = [2, 6], strides = [1, 1]} : vector<2x24xf32> to vector<2x6xf32>
    %223 = arith.negf %222 : vector<2x6xf32>
    %224 = math.exp %223 : vector<2x6xf32>
    %cst_48 = arith.constant 1.000000e+00 : f32
    %225 = vector.broadcast %cst_48 : f32 to vector<2x6xf32>
    %226 = arith.addf %225, %224 : vector<2x6xf32>
    %227 = arith.divf %225, %226 : vector<2x6xf32>
    %228 = vector.extract_strided_slice %215 {offsets = [0, 12], sizes = [2, 6], strides = [1, 1]} : vector<2x24xf32> to vector<2x6xf32>
    %229 = math.tanh %228 : vector<2x6xf32>
    %230 = vector.extract_strided_slice %215 {offsets = [0, 18], sizes = [2, 6], strides = [1, 1]} : vector<2x24xf32> to vector<2x6xf32>
    %231 = arith.negf %230 : vector<2x6xf32>
    %232 = math.exp %231 : vector<2x6xf32>
    %cst_49 = arith.constant 1.000000e+00 : f32
    %233 = vector.broadcast %cst_49 : f32 to vector<2x6xf32>
    %234 = arith.addf %233, %232 : vector<2x6xf32>
    %235 = arith.divf %233, %234 : vector<2x6xf32>
    %236 = arith.mulf %227, %181 : vector<2x6xf32>
    %237 = arith.mulf %221, %229 : vector<2x6xf32>
    %238 = arith.addf %236, %237 : vector<2x6xf32>
    %239 = math.tanh %238 : vector<2x6xf32>
    %240 = arith.mulf %235, %239 : vector<2x6xf32>
    %241 = vector.extract_strided_slice %8 {offsets = [8, 0], sizes = [2, 24], strides = [1, 1]} : vector<16x24xf32> to vector<2x24xf32>
    %cst_50 = arith.constant dense<0.000000e+00> : vector<2x24xf32>
    %242 = tpu.matmul %211, %1, %cst_50 {dimension_numbers = #tpu.dot_dimension_numbers<[1], [0], [0], [1], [0, 0, 1, 1], [], []>} : vector<2x6xf32>, vector<6x24xf32>, vector<2x24xf32> -> vector<2x24xf32>
    %243 = arith.addf %241, %242 : vector<2x24xf32>
    %244 = vector.extract_strided_slice %243 {offsets = [0, 0], sizes = [2, 6], strides = [1, 1]} : vector<2x24xf32> to vector<2x6xf32>
    %245 = arith.negf %244 : vector<2x6xf32>
    %246 = math.exp %245 : vector<2x6xf32>
    %cst_51 = arith.constant 1.000000e+00 : f32
    %247 = vector.broadcast %cst_51 : f32 to vector<2x6xf32>
    %248 = arith.addf %247, %246 : vector<2x6xf32>
    %249 = arith.divf %247, %248 : vector<2x6xf32>
    %250 = vector.extract_strided_slice %243 {offsets = [0, 6], sizes = [2, 6], strides = [1, 1]} : vector<2x24xf32> to vector<2x6xf32>
    %251 = arith.negf %250 : vector<2x6xf32>
    %252 = math.exp %251 : vector<2x6xf32>
    %cst_52 = arith.constant 1.000000e+00 : f32
    %253 = vector.broadcast %cst_52 : f32 to vector<2x6xf32>
    %254 = arith.addf %253, %252 : vector<2x6xf32>
    %255 = arith.divf %253, %254 : vector<2x6xf32>
    %256 = vector.extract_strided_slice %243 {offsets = [0, 12], sizes = [2, 6], strides = [1, 1]} : vector<2x24xf32> to vector<2x6xf32>
    %257 = math.tanh %256 : vector<2x6xf32>
    %258 = vector.extract_strided_slice %243 {offsets = [0, 18], sizes = [2, 6], strides = [1, 1]} : vector<2x24xf32> to vector<2x6xf32>
    %259 = arith.negf %258 : vector<2x6xf32>
    %260 = math.exp %259 : vector<2x6xf32>
    %cst_53 = arith.constant 1.000000e+00 : f32
    %261 = vector.broadcast %cst_53 : f32 to vector<2x6xf32>
    %262 = arith.addf %261, %260 : vector<2x6xf32>
    %263 = arith.divf %261, %262 : vector<2x6xf32>
    %264 = arith.mulf %255, %209 : vector<2x6xf32>
    %265 = arith.mulf %249, %257 : vector<2x6xf32>
    %266 = arith.addf %264, %265 : vector<2x6xf32>
    %267 = math.tanh %266 : vector<2x6xf32>
    %268 = arith.mulf %263, %267 : vector<2x6xf32>
    %cst_54 = arith.constant dense<0.000000e+00> : vector<2x24xf32>
    %269 = tpu.matmul %268, %2, %cst_54 {dimension_numbers = #tpu.dot_dimension_numbers<[1], [0], [0], [1], [0, 0, 1, 1], [], []>} : vector<2x6xf32>, vector<6x24xf32>, vector<2x24xf32> -> vector<2x24xf32>
    %cst_55 = arith.constant dense<0.000000e+00> : vector<2x24xf32>
    %270 = tpu.matmul %240, %3, %cst_55 {dimension_numbers = #tpu.dot_dimension_numbers<[1], [0], [0], [1], [0, 0, 1, 1], [], []>} : vector<2x6xf32>, vector<6x24xf32>, vector<2x24xf32> -> vector<2x24xf32>
    %271 = arith.addf %269, %270 : vector<2x24xf32>
    %272 = arith.addf %271, %11 : vector<2x24xf32>
    %273 = vector.extract_strided_slice %272 {offsets = [0, 0], sizes = [2, 6], strides = [1, 1]} : vector<2x24xf32> to vector<2x6xf32>
    %274 = arith.negf %273 : vector<2x6xf32>
    %275 = math.exp %274 : vector<2x6xf32>
    %cst_56 = arith.constant 1.000000e+00 : f32
    %276 = vector.broadcast %cst_56 : f32 to vector<2x6xf32>
    %277 = arith.addf %276, %275 : vector<2x6xf32>
    %278 = arith.divf %276, %277 : vector<2x6xf32>
    %279 = vector.extract_strided_slice %272 {offsets = [0, 6], sizes = [2, 6], strides = [1, 1]} : vector<2x24xf32> to vector<2x6xf32>
    %280 = arith.negf %279 : vector<2x6xf32>
    %281 = math.exp %280 : vector<2x6xf32>
    %cst_57 = arith.constant 1.000000e+00 : f32
    %282 = vector.broadcast %cst_57 : f32 to vector<2x6xf32>
    %283 = arith.addf %282, %281 : vector<2x6xf32>
    %284 = arith.divf %282, %283 : vector<2x6xf32>
    %285 = vector.extract_strided_slice %272 {offsets = [0, 12], sizes = [2, 6], strides = [1, 1]} : vector<2x24xf32> to vector<2x6xf32>
    %286 = math.tanh %285 : vector<2x6xf32>
    %287 = vector.extract_strided_slice %272 {offsets = [0, 18], sizes = [2, 6], strides = [1, 1]} : vector<2x24xf32> to vector<2x6xf32>
    %288 = arith.negf %287 : vector<2x6xf32>
    %289 = math.exp %288 : vector<2x6xf32>
    %cst_58 = arith.constant 1.000000e+00 : f32
    %290 = vector.broadcast %cst_58 : f32 to vector<2x6xf32>
    %291 = arith.addf %290, %289 : vector<2x6xf32>
    %292 = arith.divf %290, %291 : vector<2x6xf32>
    %293 = arith.mulf %284, %238 : vector<2x6xf32>
    %294 = arith.mulf %278, %286 : vector<2x6xf32>
    %295 = arith.addf %293, %294 : vector<2x6xf32>
    %296 = math.tanh %295 : vector<2x6xf32>
    %297 = arith.mulf %292, %296 : vector<2x6xf32>
    %298 = vector.extract_strided_slice %8 {offsets = [10, 0], sizes = [2, 24], strides = [1, 1]} : vector<16x24xf32> to vector<2x24xf32>
    %cst_59 = arith.constant dense<0.000000e+00> : vector<2x24xf32>
    %299 = tpu.matmul %268, %1, %cst_59 {dimension_numbers = #tpu.dot_dimension_numbers<[1], [0], [0], [1], [0, 0, 1, 1], [], []>} : vector<2x6xf32>, vector<6x24xf32>, vector<2x24xf32> -> vector<2x24xf32>
    %300 = arith.addf %298, %299 : vector<2x24xf32>
    %301 = vector.extract_strided_slice %300 {offsets = [0, 0], sizes = [2, 6], strides = [1, 1]} : vector<2x24xf32> to vector<2x6xf32>
    %302 = arith.negf %301 : vector<2x6xf32>
    %303 = math.exp %302 : vector<2x6xf32>
    %cst_60 = arith.constant 1.000000e+00 : f32
    %304 = vector.broadcast %cst_60 : f32 to vector<2x6xf32>
    %305 = arith.addf %304, %303 : vector<2x6xf32>
    %306 = arith.divf %304, %305 : vector<2x6xf32>
    %307 = vector.extract_strided_slice %300 {offsets = [0, 6], sizes = [2, 6], strides = [1, 1]} : vector<2x24xf32> to vector<2x6xf32>
    %308 = arith.negf %307 : vector<2x6xf32>
    %309 = math.exp %308 : vector<2x6xf32>
    %cst_61 = arith.constant 1.000000e+00 : f32
    %310 = vector.broadcast %cst_61 : f32 to vector<2x6xf32>
    %311 = arith.addf %310, %309 : vector<2x6xf32>
    %312 = arith.divf %310, %311 : vector<2x6xf32>
    %313 = vector.extract_strided_slice %300 {offsets = [0, 12], sizes = [2, 6], strides = [1, 1]} : vector<2x24xf32> to vector<2x6xf32>
    %314 = math.tanh %313 : vector<2x6xf32>
    %315 = vector.extract_strided_slice %300 {offsets = [0, 18], sizes = [2, 6], strides = [1, 1]} : vector<2x24xf32> to vector<2x6xf32>
    %316 = arith.negf %315 : vector<2x6xf32>
    %317 = math.exp %316 : vector<2x6xf32>
    %cst_62 = arith.constant 1.000000e+00 : f32
    %318 = vector.broadcast %cst_62 : f32 to vector<2x6xf32>
    %319 = arith.addf %318, %317 : vector<2x6xf32>
    %320 = arith.divf %318, %319 : vector<2x6xf32>
    %321 = arith.mulf %312, %266 : vector<2x6xf32>
    %322 = arith.mulf %306, %314 : vector<2x6xf32>
    %323 = arith.addf %321, %322 : vector<2x6xf32>
    %324 = math.tanh %323 : vector<2x6xf32>
    %325 = arith.mulf %320, %324 : vector<2x6xf32>
    %cst_63 = arith.constant dense<0.000000e+00> : vector<2x24xf32>
    %326 = tpu.matmul %325, %2, %cst_63 {dimension_numbers = #tpu.dot_dimension_numbers<[1], [0], [0], [1], [0, 0, 1, 1], [], []>} : vector<2x6xf32>, vector<6x24xf32>, vector<2x24xf32> -> vector<2x24xf32>
    %cst_64 = arith.constant dense<0.000000e+00> : vector<2x24xf32>
    %327 = tpu.matmul %297, %3, %cst_64 {dimension_numbers = #tpu.dot_dimension_numbers<[1], [0], [0], [1], [0, 0, 1, 1], [], []>} : vector<2x6xf32>, vector<6x24xf32>, vector<2x24xf32> -> vector<2x24xf32>
    %328 = arith.addf %326, %327 : vector<2x24xf32>
    %329 = arith.addf %328, %11 : vector<2x24xf32>
    %330 = vector.extract_strided_slice %329 {offsets = [0, 0], sizes = [2, 6], strides = [1, 1]} : vector<2x24xf32> to vector<2x6xf32>
    %331 = arith.negf %330 : vector<2x6xf32>
    %332 = math.exp %331 : vector<2x6xf32>
    %cst_65 = arith.constant 1.000000e+00 : f32
    %333 = vector.broadcast %cst_65 : f32 to vector<2x6xf32>
    %334 = arith.addf %333, %332 : vector<2x6xf32>
    %335 = arith.divf %333, %334 : vector<2x6xf32>
    %336 = vector.extract_strided_slice %329 {offsets = [0, 6], sizes = [2, 6], strides = [1, 1]} : vector<2x24xf32> to vector<2x6xf32>
    %337 = arith.negf %336 : vector<2x6xf32>
    %338 = math.exp %337 : vector<2x6xf32>
    %cst_66 = arith.constant 1.000000e+00 : f32
    %339 = vector.broadcast %cst_66 : f32 to vector<2x6xf32>
    %340 = arith.addf %339, %338 : vector<2x6xf32>
    %341 = arith.divf %339, %340 : vector<2x6xf32>
    %342 = vector.extract_strided_slice %329 {offsets = [0, 12], sizes = [2, 6], strides = [1, 1]} : vector<2x24xf32> to vector<2x6xf32>
    %343 = math.tanh %342 : vector<2x6xf32>
    %344 = vector.extract_strided_slice %329 {offsets = [0, 18], sizes = [2, 6], strides = [1, 1]} : vector<2x24xf32> to vector<2x6xf32>
    %345 = arith.negf %344 : vector<2x6xf32>
    %346 = math.exp %345 : vector<2x6xf32>
    %cst_67 = arith.constant 1.000000e+00 : f32
    %347 = vector.broadcast %cst_67 : f32 to vector<2x6xf32>
    %348 = arith.addf %347, %346 : vector<2x6xf32>
    %349 = arith.divf %347, %348 : vector<2x6xf32>
    %350 = arith.mulf %341, %295 : vector<2x6xf32>
    %351 = arith.mulf %335, %343 : vector<2x6xf32>
    %352 = arith.addf %350, %351 : vector<2x6xf32>
    %353 = math.tanh %352 : vector<2x6xf32>
    %354 = arith.mulf %349, %353 : vector<2x6xf32>
    %355 = vector.extract_strided_slice %8 {offsets = [12, 0], sizes = [2, 24], strides = [1, 1]} : vector<16x24xf32> to vector<2x24xf32>
    %cst_68 = arith.constant dense<0.000000e+00> : vector<2x24xf32>
    %356 = tpu.matmul %325, %1, %cst_68 {dimension_numbers = #tpu.dot_dimension_numbers<[1], [0], [0], [1], [0, 0, 1, 1], [], []>} : vector<2x6xf32>, vector<6x24xf32>, vector<2x24xf32> -> vector<2x24xf32>
    %357 = arith.addf %355, %356 : vector<2x24xf32>
    %358 = vector.extract_strided_slice %357 {offsets = [0, 0], sizes = [2, 6], strides = [1, 1]} : vector<2x24xf32> to vector<2x6xf32>
    %359 = arith.negf %358 : vector<2x6xf32>
    %360 = math.exp %359 : vector<2x6xf32>
    %cst_69 = arith.constant 1.000000e+00 : f32
    %361 = vector.broadcast %cst_69 : f32 to vector<2x6xf32>
    %362 = arith.addf %361, %360 : vector<2x6xf32>
    %363 = arith.divf %361, %362 : vector<2x6xf32>
    %364 = vector.extract_strided_slice %357 {offsets = [0, 6], sizes = [2, 6], strides = [1, 1]} : vector<2x24xf32> to vector<2x6xf32>
    %365 = arith.negf %364 : vector<2x6xf32>
    %366 = math.exp %365 : vector<2x6xf32>
    %cst_70 = arith.constant 1.000000e+00 : f32
    %367 = vector.broadcast %cst_70 : f32 to vector<2x6xf32>
    %368 = arith.addf %367, %366 : vector<2x6xf32>
    %369 = arith.divf %367, %368 : vector<2x6xf32>
    %370 = vector.extract_strided_slice %357 {offsets = [0, 12], sizes = [2, 6], strides = [1, 1]} : vector<2x24xf32> to vector<2x6xf32>
    %371 = math.tanh %370 : vector<2x6xf32>
    %372 = vector.extract_strided_slice %357 {offsets = [0, 18], sizes = [2, 6], strides = [1, 1]} : vector<2x24xf32> to vector<2x6xf32>
    %373 = arith.negf %372 : vector<2x6xf32>
    %374 = math.exp %373 : vector<2x6xf32>
    %cst_71 = arith.constant 1.000000e+00 : f32
    %375 = vector.broadcast %cst_71 : f32 to vector<2x6xf32>
    %376 = arith.addf %375, %374 : vector<2x6xf32>
    %377 = arith.divf %375, %376 : vector<2x6xf32>
    %378 = arith.mulf %369, %323 : vector<2x6xf32>
    %379 = arith.mulf %363, %371 : vector<2x6xf32>
    %380 = arith.addf %378, %379 : vector<2x6xf32>
    %381 = math.tanh %380 : vector<2x6xf32>
    %382 = arith.mulf %377, %381 : vector<2x6xf32>
    %cst_72 = arith.constant dense<0.000000e+00> : vector<2x24xf32>
    %383 = tpu.matmul %382, %2, %cst_72 {dimension_numbers = #tpu.dot_dimension_numbers<[1], [0], [0], [1], [0, 0, 1, 1], [], []>} : vector<2x6xf32>, vector<6x24xf32>, vector<2x24xf32> -> vector<2x24xf32>
    %cst_73 = arith.constant dense<0.000000e+00> : vector<2x24xf32>
    %384 = tpu.matmul %354, %3, %cst_73 {dimension_numbers = #tpu.dot_dimension_numbers<[1], [0], [0], [1], [0, 0, 1, 1], [], []>} : vector<2x6xf32>, vector<6x24xf32>, vector<2x24xf32> -> vector<2x24xf32>
    %385 = arith.addf %383, %384 : vector<2x24xf32>
    %386 = arith.addf %385, %11 : vector<2x24xf32>
    %387 = vector.extract_strided_slice %386 {offsets = [0, 0], sizes = [2, 6], strides = [1, 1]} : vector<2x24xf32> to vector<2x6xf32>
    %388 = arith.negf %387 : vector<2x6xf32>
    %389 = math.exp %388 : vector<2x6xf32>
    %cst_74 = arith.constant 1.000000e+00 : f32
    %390 = vector.broadcast %cst_74 : f32 to vector<2x6xf32>
    %391 = arith.addf %390, %389 : vector<2x6xf32>
    %392 = arith.divf %390, %391 : vector<2x6xf32>
    %393 = vector.extract_strided_slice %386 {offsets = [0, 6], sizes = [2, 6], strides = [1, 1]} : vector<2x24xf32> to vector<2x6xf32>
    %394 = arith.negf %393 : vector<2x6xf32>
    %395 = math.exp %394 : vector<2x6xf32>
    %cst_75 = arith.constant 1.000000e+00 : f32
    %396 = vector.broadcast %cst_75 : f32 to vector<2x6xf32>
    %397 = arith.addf %396, %395 : vector<2x6xf32>
    %398 = arith.divf %396, %397 : vector<2x6xf32>
    %399 = vector.extract_strided_slice %386 {offsets = [0, 12], sizes = [2, 6], strides = [1, 1]} : vector<2x24xf32> to vector<2x6xf32>
    %400 = math.tanh %399 : vector<2x6xf32>
    %401 = vector.extract_strided_slice %386 {offsets = [0, 18], sizes = [2, 6], strides = [1, 1]} : vector<2x24xf32> to vector<2x6xf32>
    %402 = arith.negf %401 : vector<2x6xf32>
    %403 = math.exp %402 : vector<2x6xf32>
    %cst_76 = arith.constant 1.000000e+00 : f32
    %404 = vector.broadcast %cst_76 : f32 to vector<2x6xf32>
    %405 = arith.addf %404, %403 : vector<2x6xf32>
    %406 = arith.divf %404, %405 : vector<2x6xf32>
    %407 = arith.mulf %398, %352 : vector<2x6xf32>
    %408 = arith.mulf %392, %400 : vector<2x6xf32>
    %409 = arith.addf %407, %408 : vector<2x6xf32>
    %410 = math.tanh %409 : vector<2x6xf32>
    %411 = arith.mulf %406, %410 : vector<2x6xf32>
    %412 = vector.extract_strided_slice %8 {offsets = [14, 0], sizes = [2, 24], strides = [1, 1]} : vector<16x24xf32> to vector<2x24xf32>
    %cst_77 = arith.constant dense<0.000000e+00> : vector<2x24xf32>
    %413 = tpu.matmul %382, %1, %cst_77 {dimension_numbers = #tpu.dot_dimension_numbers<[1], [0], [0], [1], [0, 0, 1, 1], [], []>} : vector<2x6xf32>, vector<6x24xf32>, vector<2x24xf32> -> vector<2x24xf32>
    %414 = arith.addf %412, %413 : vector<2x24xf32>
    %415 = vector.extract_strided_slice %414 {offsets = [0, 0], sizes = [2, 6], strides = [1, 1]} : vector<2x24xf32> to vector<2x6xf32>
    %416 = arith.negf %415 : vector<2x6xf32>
    %417 = math.exp %416 : vector<2x6xf32>
    %cst_78 = arith.constant 1.000000e+00 : f32
    %418 = vector.broadcast %cst_78 : f32 to vector<2x6xf32>
    %419 = arith.addf %418, %417 : vector<2x6xf32>
    %420 = arith.divf %418, %419 : vector<2x6xf32>
    %421 = vector.extract_strided_slice %414 {offsets = [0, 6], sizes = [2, 6], strides = [1, 1]} : vector<2x24xf32> to vector<2x6xf32>
    %422 = arith.negf %421 : vector<2x6xf32>
    %423 = math.exp %422 : vector<2x6xf32>
    %cst_79 = arith.constant 1.000000e+00 : f32
    %424 = vector.broadcast %cst_79 : f32 to vector<2x6xf32>
    %425 = arith.addf %424, %423 : vector<2x6xf32>
    %426 = arith.divf %424, %425 : vector<2x6xf32>
    %427 = vector.extract_strided_slice %414 {offsets = [0, 12], sizes = [2, 6], strides = [1, 1]} : vector<2x24xf32> to vector<2x6xf32>
    %428 = math.tanh %427 : vector<2x6xf32>
    %429 = vector.extract_strided_slice %414 {offsets = [0, 18], sizes = [2, 6], strides = [1, 1]} : vector<2x24xf32> to vector<2x6xf32>
    %430 = arith.negf %429 : vector<2x6xf32>
    %431 = math.exp %430 : vector<2x6xf32>
    %cst_80 = arith.constant 1.000000e+00 : f32
    %432 = vector.broadcast %cst_80 : f32 to vector<2x6xf32>
    %433 = arith.addf %432, %431 : vector<2x6xf32>
    %434 = arith.divf %432, %433 : vector<2x6xf32>
    %435 = arith.mulf %426, %380 : vector<2x6xf32>
    %436 = arith.mulf %420, %428 : vector<2x6xf32>
    %437 = arith.addf %435, %436 : vector<2x6xf32>
    %438 = math.tanh %437 : vector<2x6xf32>
    %439 = arith.mulf %434, %438 : vector<2x6xf32>
    %cst_81 = arith.constant dense<0.000000e+00> : vector<2x24xf32>
    %440 = tpu.matmul %439, %2, %cst_81 {dimension_numbers = #tpu.dot_dimension_numbers<[1], [0], [0], [1], [0, 0, 1, 1], [], []>} : vector<2x6xf32>, vector<6x24xf32>, vector<2x24xf32> -> vector<2x24xf32>
    %cst_82 = arith.constant dense<0.000000e+00> : vector<2x24xf32>
    %441 = tpu.matmul %411, %3, %cst_82 {dimension_numbers = #tpu.dot_dimension_numbers<[1], [0], [0], [1], [0, 0, 1, 1], [], []>} : vector<2x6xf32>, vector<6x24xf32>, vector<2x24xf32> -> vector<2x24xf32>
    %442 = arith.addf %440, %441 : vector<2x24xf32>
    %443 = arith.addf %442, %11 : vector<2x24xf32>
    %444 = vector.extract_strided_slice %443 {offsets = [0, 0], sizes = [2, 6], strides = [1, 1]} : vector<2x24xf32> to vector<2x6xf32>
    %445 = arith.negf %444 : vector<2x6xf32>
    %446 = math.exp %445 : vector<2x6xf32>
    %cst_83 = arith.constant 1.000000e+00 : f32
    %447 = vector.broadcast %cst_83 : f32 to vector<2x6xf32>
    %448 = arith.addf %447, %446 : vector<2x6xf32>
    %449 = arith.divf %447, %448 : vector<2x6xf32>
    %450 = vector.extract_strided_slice %443 {offsets = [0, 6], sizes = [2, 6], strides = [1, 1]} : vector<2x24xf32> to vector<2x6xf32>
    %451 = arith.negf %450 : vector<2x6xf32>
    %452 = math.exp %451 : vector<2x6xf32>
    %cst_84 = arith.constant 1.000000e+00 : f32
    %453 = vector.broadcast %cst_84 : f32 to vector<2x6xf32>
    %454 = arith.addf %453, %452 : vector<2x6xf32>
    %455 = arith.divf %453, %454 : vector<2x6xf32>
    %456 = vector.extract_strided_slice %443 {offsets = [0, 12], sizes = [2, 6], strides = [1, 1]} : vector<2x24xf32> to vector<2x6xf32>
    %457 = math.tanh %456 : vector<2x6xf32>
    %458 = vector.extract_strided_slice %443 {offsets = [0, 18], sizes = [2, 6], strides = [1, 1]} : vector<2x24xf32> to vector<2x6xf32>
    %459 = arith.negf %458 : vector<2x6xf32>
    %460 = math.exp %459 : vector<2x6xf32>
    %cst_85 = arith.constant 1.000000e+00 : f32
    %461 = vector.broadcast %cst_85 : f32 to vector<2x6xf32>
    %462 = arith.addf %461, %460 : vector<2x6xf32>
    %463 = arith.divf %461, %462 : vector<2x6xf32>
    %464 = arith.mulf %455, %409 : vector<2x6xf32>
    %465 = arith.mulf %449, %457 : vector<2x6xf32>
    %466 = arith.addf %464, %465 : vector<2x6xf32>
    %467 = math.tanh %466 : vector<2x6xf32>
    %468 = arith.mulf %463, %467 : vector<2x6xf32>
    %469 = vector.shape_cast %69 : vector<2x6xf32> to vector<1x2x6xf32>
    %470 = vector.shape_cast %126 : vector<2x6xf32> to vector<1x2x6xf32>
    %471 = vector.shape_cast %183 : vector<2x6xf32> to vector<1x2x6xf32>
    %472 = vector.shape_cast %240 : vector<2x6xf32> to vector<1x2x6xf32>
    %473 = vector.shape_cast %297 : vector<2x6xf32> to vector<1x2x6xf32>
    %474 = vector.shape_cast %354 : vector<2x6xf32> to vector<1x2x6xf32>
    %475 = vector.shape_cast %411 : vector<2x6xf32> to vector<1x2x6xf32>
    %476 = vector.shape_cast %468 : vector<2x6xf32> to vector<1x2x6xf32>
    %477 = tpu.concatenate %469, %470, %471, %472, %473, %474, %475, %476 in 0 : vector<1x2x6xf32>, vector<1x2x6xf32>, vector<1x2x6xf32>, vector<1x2x6xf32>, vector<1x2x6xf32>, vector<1x2x6xf32>, vector<1x2x6xf32>, vector<1x2x6xf32> -> vector<8x2x6xf32>
    %c0_86 = arith.constant 0 : index
    %c0_87 = arith.constant 0 : index
    %478 = vector.load %arg7[%c0_86, %c0_87] : memref<1x6xf32, #tpu.memory_space<vmem>>, vector<1x6xf32>
    %479 = vector.shape_cast %478 : vector<1x6xf32> to vector<1x1x6xf32>
    %480 = vector.broadcast %479 : vector<1x1x6xf32> to vector<8x2x6xf32>
    %481 = arith.mulf %477, %480 : vector<8x2x6xf32>
    %cst_88 = arith.constant dense<0.000000e+00> : vector<8x2xf32>
    %482 = vector.multi_reduction <add>, %481, %cst_88 [2] : vector<8x2x6xf32> to vector<8x2xf32>
    %c0_89 = arith.constant 0 : index
    %c0_90 = arith.constant 0 : index
    %483 = vector.load %arg8[%c0_89, %c0_90] : memref<1x1xf32, #tpu.memory_space<vmem>>, vector<1x1xf32>
    %484 = vector.broadcast %483 : vector<1x1xf32> to vector<8x2xf32>
    %485 = arith.addf %482, %484 : vector<8x2xf32>
    %c0_91 = arith.constant 0 : index
    %c0_92 = arith.constant 0 : index
    %486 = vector.load %arg9[%c0_91, %c0_92] : memref<8x2xf32, #tpu.memory_space<vmem>>, vector<8x2xf32>
    tpu.vector_store %arg9[%c0_91, %c0_92], %485 {strides = array<i32>} : memref<8x2xf32, #tpu.memory_space<vmem>>, vector<8x2xf32>,
    return
  }
}

</mosaic_0001>

<bundles_post_ra>
// kernel: tpu_custom_call.1
= control target key start
LH: loop header
LB: loop body
LE: loop exit
PB: predicated region body
PF: predicated region fallthrough
CT: control target
= control target key end

     0   :  { %vm54_vm0 = vcmask 1044480   ;;  %vm47_vm1 = vcmask 39936   ;;  %vm144_vm2 = vcmask 1045504   ;;  %v2892_v3 = vmov 0.0   ;;  %s2898_s24 = smov 18   ;;  %s3306_s1 = inlined_call_operand.vmem [shape: f32[5,24], index: 1, kind: input, shape index: {}]   ;;  %s3307_s0 = inlined_call_operand.vmem [shape: f32[16,5], index: 0, kind: input, shape index: {}]   ;;  %s3308_s2 = inlined_call_operand.vmem [shape: f32[6,24], index: 2, kind: input, shape index: {}]   ;;  %s3309_s3 = inlined_call_operand.vmem [shape: f32[1,24], index: 3, kind: input, shape index: {}]   ;;  %s3310_s5 = inlined_call_operand.vmem [shape: f32[6,24], index: 5, kind: input, shape index: {}]   ;;  %s3311_s4 = inlined_call_operand.vmem [shape: f32[6,24], index: 4, kind: input, shape index: {}]   ;;  %s3312_s6 = inlined_call_operand.vmem [shape: f32[1,24], index: 6, kind: input, shape index: {}]   ;;  %s3313_s7 = inlined_call_operand.vmem [shape: f32[1,6], index: 7, kind: input, shape index: {}]   ;;  %s3314_s8 = inlined_call_operand.<no memory space> [shape: f32[1,1], index: 8, kind: input, shape index: {}]   ;;  %s3315_s9 = inlined_call_operand.vmem [shape: f32[8,2], index: 9, kind: output, shape index: {}]  }
   0x1   :  { %v34_v0 = vld [vmem:[%s3306_s1] sm:$0x1f]  ;;  %v39_v2 = vld [vmem:[%s3307_s0 + $0x8] sm:$0xff]  ;;  %2634 = vmatprep.subr.mxu1 %v2892_v3  ;;  %vm2893_vm3 = vmmov 0   ;;  %vm140_vm4 = vcmask 48128   ;;  %vm2403_vm5 = vcmask 41984  }
   0x2   :  { %v38_v1 = vld [vmem:[%s3307_s0] sm:$0xff]  ;;  %2629 = vmatprep.subr.msk.mxu0 %vm54_vm0, %v34_v0  ;;  %2636 = vmatprep.mubr.msk.f32.mxu1 %vm2893_vm3, %v2892_v3  ;;  %vm2488_vm6 = vcmask 1041409   ;;  %vm2490_vm7 = vcmask 1042434   ;;  %vm2492_vm8 = vcmask 1043459   ;;  %vm2494_vm9 = vcmask 1044484  }
   0x3   :  { %2631 = vmatprep.mubr.msk.f32.mxu0 %vm47_vm1, %v38_v1  ;;  %v2963_v4 = vld [vmem:[%s3308_s2] sm:$0x3f]  ;;  %2630 = vmatpush3.msk.msra.mxu0 %vm54_vm0, %v34_v0  ;;  %s2894_s2 = smov 116   ;;  %vm2496_vm10 = vcmask 1045509   ;;  %vm2498_vm11 = vcmask 1046534   ;;  %vm2500_vm12 = vcmask 1047559  }
   0x4   :  { %2635 = vmatpush3.msk.msra.mxu1 %vm144_vm2, %v2963_v4  ;;  %2632 = vmatmul.mubr.msk.f32.vlgmr.msra.gmra.mxu0 %vm47_vm1, %v39_v2  ;;  %v2509_v5 = vld [vmem:[%s3309_s3] ss:$0 sm:$0xff]  ;;  %s2895_s3 = smov 6   ;;  %vm2503_vm13 = vcmask 15360  }
   0x5   :  { %2637 = vmatmul.mubr.f32.vlgmr.msra.gmra.mxu1 %v2892_v3  ;;  %2639 = vmatprep.subr.mxu0 %v2892_v3  ;;  %v2992_v23 = vld [vmem:[%s3310_s5] sm:$0x3f]  ;;  %s2897_s5 = smov 110  }
   0x6   :  { %2641 = vmatprep.mubr.msk.f32.mxu0 %vm2893_vm3, %v2892_v3  ;;  %2644 = vmatprep.subr.mxu1 %v2892_v3  ;;  %v2997_v24 = vld [vmem:[%s3311_s4] sm:$0x3f]  ;;  %s2896_s4 = smov 12  }
   0x7   :  { %2646 = vmatprep.mubr.msk.f32.mxu1 %vm2893_vm3, %v2892_v3  ;;  %2640 = vmatpush3.msk.msra.mxu0 %vm144_vm2, %v2992_v23  ;;  %v3028_v31 = vld [vmem:[%s3312_s6] ss:$0 sm:$0xff] }
   0x8   :  { %2645 = vmatpush3.msk.msra.mxu1 %vm144_vm2, %v2997_v24  ;;  %2642 = vmatmul.mubr.f32.vlgmr.msra.gmra.mxu0 %v2892_v3 }
   0x9   :  { %2649 = vmatprep.subr.mxu0 %v2892_v3  ;;  %2651 = vmatprep.mubr.msk.f32.mxu0 %vm2893_vm3, %v2892_v3 }
   0xa   :  { %2650 = vmatpush3.msk.msra.mxu0 %vm144_vm2, %v2963_v4  ;;  %2654 = vmatprep.subr.mxu1 %v2892_v3 }
   0xb   :  { %2659 = vmatprep.subr.mxu0 %v2892_v3 }
  0xc4   :  { %v2633_v6 = vpop.f32.mrf.mxu0 }
  0xc5   :  { %v2979_v7 = vadd.f32 %v2633_v6, %v2509_v5  ;;  %v214_v8 = vpop.f32.mrf.mxu1 }
  0xc6   :  { %v124_v9 = vpop.f32.mrf.mxu0 }
  0xc7   :  { %v2981_v10 = vadd.f32 %v2509_v5, %v124_v9  ;;  %v2638_v11 = vpop.f32.mrf.mxu1 }
  0xc8   :  { %v312_v28 = vpop.f32.mrf.mxu0 }
  0xc9   :  { %v218_v12 = vadd.f32 %v214_v8, %v2981_v10 }
  0xca   :  { %v2643_v29 = vpop.f32.mrf.mxu0 }
  0xcb   :  { %2764 = vtanh.f32 %v218_v12  ;;  %v2515_v14 = vmul.f32 -1.442695, %v218_v12 }
  0xcd   :  { %2766 = vpow2.f32 %v2515_v14 }
  0xd8   :  { %v2765_v13 = vpop.eup %2764 }
  0xd9   :  { %228 = vrot.lane.b32.xlu0 %v2765_v13, %s2894_s2 }
  0xda   :  { %v2767_v15 = vpop.eup %2766 }
  0xdb   :  { %v222_v16 = vadd.f32 1.0, %v2767_v15 }
  0xdd   :  { %2768 = vrcp.f32 %v222_v16 }
  0xea   :  { %v2769_v17 = vpop.eup %2768 }
  0xeb   :  { %v226_v20 = vmul.f32 0.0, %v2769_v17 }
 0x14b   :  { %v229_v18 = vpop.permute.xlu0 %228 }
 0x14c   :  { %v231_v19 = vmul.f32 %v2769_v17, %v229_v18 }
 0x14e   :  { %233 = vrot.lane.b32.xlu0 %v231_v19, %s2895_s3 }
 0x1c0   :  { %v234_v21 = vpop.permute.xlu0 %233 }
 0x1c1   :  { %v2986_v22 = vadd.f32 %v234_v21, %v226_v20 }
 0x1c3   :  { %2770 = vtanh.f32 %v2986_v22  ;;  %v501_v54 = vrot.slane %v2986_v22, 6 }
 0x1d0   :  { %v2771_v25 = vpop.eup %2770 }
 0x1d1   :  { %239 = vrot.lane.b32.xlu1 %v2771_v25, %s2896_s4 }
 0x243   :  { %v240_v26 = vpop.permute.xlu1 %239 }
 0x244   :  { %v242_v27 = vmul.f32 %v2769_v17, %v240_v26 }
 0x246   :  { %317 = vrot.lane.b32.xlu1 %v242_v27, %s2897_s5 }
 0x2b8   :  { %v318_v30 = vpop.permute.xlu1 %317 }
 0x2b9   :  { %2647 = vmatmul.mubr.msk.f32.vlgmr.msra.gmra.mxu1 %vm140_vm4, %v318_v30  ;;  %2652 = vmatmul.mubr.msk.f32.vlgmr.msra.gmra.mxu0 %vm140_vm4, %v318_v30 }
 0x2ba   :  { %2655 = vmatpush3.msk.msra.mxu1 %vm144_vm2, %v2992_v23  ;;  %2660 = vmatpush3.msk.msra.mxu0 %vm144_vm2, %v2997_v24 }
 0x2bb   :  { %2656 = vmatprep.mubr.msk.f32.mxu1 %vm2893_vm3, %v2892_v3  ;;  %2664 = vmatprep.subr.mxu1 %v2892_v3 }
 0x2bc   :  { %2661 = vmatprep.mubr.msk.f32.mxu0 %vm2893_vm3, %v2892_v3  ;;  %2669 = vmatprep.subr.mxu0 %v2892_v3 }
 0x379   :  { %v390_v32 = vpop.f32.mrf.mxu1  ;;  %v485_v33 = vpop.f32.mrf.mxu0 }
 0x37a   :  { %v391_v34 = vadd.f32 %v390_v32, %v312_v28  ;;  %v490_v35 = vrot.slane %v485_v33, 6 }
 0x37b   :  { %v2648_v36 = vpop.f32.mrf.mxu1  ;;  %v2653_v37 = vpop.f32.mrf.mxu0 }
 0x37c   :  { %v394_v38 = vadd.f32 %v3028_v31, %v391_v34  ;;  %v492_v39 = vadd.f32 %v490_v35, %v2981_v10 }
 0x37e   :  { %2772 = vtanh.f32 %v394_v38  ;;  %v2519_v42 = vmul.f32 -1.442695, %v394_v38  ;;  %v2522_v43 = vmul.f32 -1.442695, %v492_v39 }
 0x37f   :  { %2774 = vtanh.f32 %v492_v39 }
 0x380   :  { %2776 = vpow2.f32 %v2519_v42 }
 0x381   :  { %2778 = vpow2.f32 %v2522_v43 }
 0x38b   :  { %v2773_v40 = vpop.eup %2772 }
 0x38c   :  { %v2775_v41 = vpop.eup %2774  ;;  %404 = vrot.lane.b32.xlu0 %v2773_v40, %s2894_s2 }
 0x38d   :  { %505 = vrot.lane.b32.xlu1 %v2775_v41, %s2894_s2  ;;  %v2777_v44 = vpop.eup %2776 }
 0x38e   :  { %v2779_v45 = vpop.eup %2778  ;;  %v398_v46 = vadd.f32 1.0, %v2777_v44 }
 0x38f   :  { %v496_v47 = vadd.f32 1.0, %v2779_v45 }
 0x390   :  { %2780 = vrcp.f32 %v398_v46 }
 0x391   :  { %2782 = vrcp.f32 %v496_v47 }
 0x39d   :  { %v2781_v48 = vpop.eup %2780 }
 0x39e   :  { %v2783_v50 = vpop.eup %2782  ;;  %v402_v55 = vmul.f32 0.0, %v2781_v48 }
 0x39f   :  { %v503_v56 = vmul.f32 %v2783_v50, %v501_v54 }
 0x3fe   :  { %v405_v49 = vpop.permute.xlu0 %404 }
 0x3ff   :  { %v506_v51 = vpop.permute.xlu1 %505  ;;  %v407_v52 = vmul.f32 %v2781_v48, %v405_v49 }
 0x400   :  { %v508_v53 = vmul.f32 %v2783_v50, %v506_v51 }
 0x401   :  { %409 = vrot.lane.b32.xlu0 %v407_v52, %s2895_s3 }
 0x402   :  { %510 = vrot.lane.b32.xlu1 %v508_v53, %s2895_s3 }
 0x473   :  { %v410_v57 = vpop.permute.xlu0 %409 }
 0x474   :  { %v511_v58 = vpop.permute.xlu1 %510  ;;  %v3037_v59 = vadd.f32 %v410_v57, %v402_v55 }
 0x475   :  { %v3039_v60 = vadd.f32 %v511_v58, %v503_v56 }
 0x476   :  { %2784 = vtanh.f32 %v3037_v59 }
 0x477   :  { %2786 = vtanh.f32 %v3039_v60  ;;  %v778_v37 = vrot.slane %v3039_v60, 6 }
 0x483   :  { %v2785_v61 = vpop.eup %2784 }
 0x484   :  { %v2787_v62 = vpop.eup %2786  ;;  %415 = vrot.lane.b32.xlu0 %v2785_v61, %s2896_s4 }
 0x485   :  { %516 = vrot.lane.b32.xlu1 %v2787_v62, %s2896_s4 }
 0x4f6   :  { %v416_v63 = vpop.permute.xlu0 %415 }
 0x4f7   :  { %v517_v0 = vpop.permute.xlu1 %516  ;;  %v3045_v1 = vmul.f32 %v2781_v48, %v416_v63 }
 0x4f8   :  { %v519_v2 = vmul.f32 %v2783_v50, %v517_v0 }
 0x4f9   :  { %521 = vrot.lane.b32.xlu0 %v3045_v1, %s2897_s5 }
 0x4fa   :  { %v596_v5 = vrot.slane %v519_v2, 2 }
 0x4fc   :  { %597 = vrot.lane.b32.xlu1 %v596_v5, %s2897_s5 }
 0x56b   :  { %v522_v6 = vpop.permute.xlu0 %521 }
 0x56c   :  { %2657 = vmatmul.mubr.msk.f32.vlgmr.msra.gmra.mxu1 %vm140_vm4, %v522_v6 }
 0x56d   :  { %2665 = vmatpush3.msk.msra.mxu1 %vm144_vm2, %v2963_v4  ;;  %2666 = vmatprep.mubr.msk.f32.mxu1 %vm2893_vm3, %v2892_v3 }
 0x56e   :  { %v598_v8 = vpop.permute.xlu1 %597  ;;  %2674 = vmatprep.subr.mxu1 %v2892_v3 }
 0x56f   :  { %2662 = vmatmul.mubr.msk.f32.vlgmr.msra.gmra.mxu0 %vm140_vm4, %v598_v8 }
 0x570   :  { %2667 = vmatmul.mubr.msk.f32.vlgmr.msra.gmra.mxu1 %vm140_vm4, %v598_v8  ;;  %2670 = vmatpush3.msk.msra.mxu0 %vm144_vm2, %v2992_v23 }
 0x571   :  { %2671 = vmatprep.mubr.msk.f32.mxu0 %vm2893_vm3, %v2892_v3  ;;  %2679 = vmatprep.subr.mxu0 %v2892_v3 }
 0x572   :  { %2675 = vmatpush3.msk.msra.mxu1 %vm144_vm2, %v2997_v24  ;;  %2676 = vmatprep.mubr.msk.f32.mxu1 %vm2893_vm3, %v2892_v3 }
 0x573   :  { %2684 = vmatprep.subr.mxu1 %v2892_v3 }
 0x62c   :  { %v591_v9 = vpop.f32.mrf.mxu1 }
 0x62e   :  { %v2658_v11 = vpop.f32.mrf.mxu1 }
 0x62f   :  { %v667_v12 = vpop.f32.mrf.mxu0 }
 0x630   :  { %v668_v13 = vadd.f32 %v667_v12, %v591_v9  ;;  %v762_v14 = vpop.f32.mrf.mxu1 }
 0x631   :  { %v2663_v15 = vpop.f32.mrf.mxu0  ;;  %v767_v16 = vrot.slane %v762_v14, 4 }
 0x632   :  { %v671_v17 = vadd.f32 %v3028_v31, %v668_v13  ;;  %v2668_v18 = vpop.f32.mrf.mxu1 }
 0x633   :  { %v769_v19 = vadd.f32 %v767_v16, %v2981_v10 }
 0x634   :  { %2788 = vtanh.f32 %v671_v17  ;;  %v2527_v22 = vmul.f32 -1.442695, %v671_v17 }
 0x635   :  { %2790 = vtanh.f32 %v769_v19  ;;  %v2530_v25 = vmul.f32 -1.442695, %v769_v19 }
 0x636   :  { %2792 = vpow2.f32 %v2527_v22 }
 0x637   :  { %2794 = vpow2.f32 %v2530_v25 }
 0x641   :  { %v2789_v20 = vpop.eup %2788 }
 0x642   :  { %v2791_v21 = vpop.eup %2790  ;;  %681 = vrot.lane.b32.xlu0 %v2789_v20, %s2894_s2 }
 0x643   :  { %782 = vrot.lane.b32.xlu1 %v2791_v21, %s2894_s2  ;;  %v2793_v26 = vpop.eup %2792 }
 0x644   :  { %v2795_v27 = vpop.eup %2794  ;;  %v675_v28 = vadd.f32 1.0, %v2793_v26 }
 0x645   :  { %v773_v29 = vadd.f32 1.0, %v2795_v27 }
 0x646   :  { %2796 = vrcp.f32 %v675_v28 }
 0x647   :  { %2798 = vrcp.f32 %v773_v29 }
 0x653   :  { %v2797_v30 = vpop.eup %2796 }
 0x654   :  { %v2799_v33 = vpop.eup %2798  ;;  %v679_v38 = vmul.f32 %v2797_v30, %v3037_v59 }
 0x655   :  { %v780_v40 = vmul.f32 %v2799_v33, %v778_v37 }
 0x6b4   :  { %v682_v32 = vpop.permute.xlu0 %681 }
 0x6b5   :  { %v684_v34 = vmul.f32 %v2797_v30, %v682_v32  ;;  %v783_v35 = vpop.permute.xlu1 %782 }
 0x6b6   :  { %v785_v36 = vmul.f32 %v2799_v33, %v783_v35 }
 0x6b7   :  { %686 = vrot.lane.b32.xlu0 %v684_v34, %s2895_s3 }
 0x6b8   :  { %787 = vrot.lane.b32.xlu1 %v785_v36, %s2895_s3 }
 0x729   :  { %v687_v39 = vpop.permute.xlu0 %686 }
 0x72a   :  { %v3076_v41 = vadd.f32 %v687_v39, %v679_v38  ;;  %v788_v42 = vpop.permute.xlu1 %787 }
 0x72b   :  { %v3078_v43 = vadd.f32 %v788_v42, %v780_v40 }
 0x72c   :  { %2800 = vtanh.f32 %v3076_v41 }
 0x72d   :  { %2802 = vtanh.f32 %v3078_v43  ;;  %v1055_v17 = vrot.slane %v3078_v43, 6 }
 0x739   :  { %v2801_v44 = vpop.eup %2800 }
 0x73a   :  { %v2803_v45 = vpop.eup %2802  ;;  %692 = vrot.lane.b32.xlu0 %v2801_v44, %s2896_s4 }
 0x73b   :  { %793 = vrot.lane.b32.xlu1 %v2803_v45, %s2896_s4 }
 0x7ac   :  { %v693_v46 = vpop.permute.xlu0 %692 }
 0x7ad   :  { %v3084_v47 = vmul.f32 %v2797_v30, %v693_v46  ;;  %v794_v48 = vpop.permute.xlu1 %793 }
 0x7ae   :  { %v796_v49 = vmul.f32 %v2799_v33, %v794_v48 }
 0x7af   :  { %798 = vrot.lane.b32.xlu0 %v3084_v47, %s2897_s5 }
 0x7b0   :  { %v873_v50 = vrot.slane %v796_v49, 4 }
 0x7b2   :  { %874 = vrot.lane.b32.xlu1 %v873_v50, %s2897_s5 }
 0x821   :  { %v799_v51 = vpop.permute.xlu0 %798 }
 0x822   :  { %2672 = vmatmul.mubr.msk.f32.vlgmr.msra.gmra.mxu0 %vm140_vm4, %v799_v51 }
 0x823   :  { %2680 = vmatpush3.msk.msra.mxu0 %vm144_vm2, %v2963_v4  ;;  %2681 = vmatprep.mubr.msk.f32.mxu0 %vm2893_vm3, %v2892_v3 }
 0x824   :  { %v875_v52 = vpop.permute.xlu1 %874  ;;  %2689 = vmatprep.subr.mxu0 %v2892_v3 }
 0x825   :  { %2677 = vmatmul.mubr.msk.f32.vlgmr.msra.gmra.mxu1 %vm140_vm4, %v875_v52 }
 0x826   :  { %2682 = vmatmul.mubr.msk.f32.vlgmr.msra.gmra.mxu0 %vm140_vm4, %v875_v52  ;;  %2685 = vmatpush3.msk.msra.mxu1 %vm144_vm2, %v2992_v23 }
 0x827   :  { %2690 = vmatpush3.msk.msra.mxu0 %vm144_vm2, %v2997_v24  ;;  %2686 = vmatprep.mubr.msk.f32.mxu1 %vm2893_vm3, %v2892_v3 }
 0x828   :  { %2691 = vmatprep.mubr.msk.f32.mxu0 %vm2893_vm3, %v2892_v3  ;;  %2694 = vmatprep.subr.mxu1 %v2892_v3 }
 0x829   :  { %2699 = vmatprep.subr.mxu0 %v2892_v3 }
 0x8e2   :  { %v868_v53 = vpop.f32.mrf.mxu0 }
 0x8e4   :  { %v2673_v54 = vpop.f32.mrf.mxu0 }
 0x8e5   :  { %v944_v55 = vpop.f32.mrf.mxu1 }
 0x8e6   :  { %v945_v56 = vadd.f32 %v944_v55, %v868_v53  ;;  %v1039_v57 = vpop.f32.mrf.mxu0 }
 0x8e7   :  { %v1044_v58 = vrot.slane %v1039_v57, 2  ;;  %v2678_v59 = vpop.f32.mrf.mxu1 }
 0x8e8   :  { %v948_v60 = vadd.f32 %v3028_v31, %v945_v56  ;;  %v2683_v61 = vpop.f32.mrf.mxu0 }
 0x8e9   :  { %v1046_v62 = vadd.f32 %v1044_v58, %v2981_v10 }
 0x8ea   :  { %2804 = vtanh.f32 %v948_v60  ;;  %v2535_v2 = vmul.f32 -1.442695, %v948_v60 }
 0x8eb   :  { %2806 = vtanh.f32 %v1046_v62  ;;  %v2538_v5 = vmul.f32 -1.442695, %v1046_v62 }
 0x8ec   :  { %2808 = vpow2.f32 %v2535_v2 }
 0x8ed   :  { %2810 = vpow2.f32 %v2538_v5 }
 0x8f7   :  { %v2805_v63 = vpop.eup %2804 }
 0x8f8   :  { %v2807_v0 = vpop.eup %2806  ;;  %958 = vrot.lane.b32.xlu1 %v2805_v63, %s2894_s2 }
 0x8f9   :  { %1059 = vrot.lane.b32.xlu0 %v2807_v0, %s2894_s2  ;;  %v2809_v6 = vpop.eup %2808 }
 0x8fa   :  { %v2811_v8 = vpop.eup %2810  ;;  %v952_v9 = vadd.f32 1.0, %v2809_v6 }
 0x8fb   :  { %v1050_v11 = vadd.f32 1.0, %v2811_v8 }
 0x8fc   :  { %2812 = vrcp.f32 %v952_v9 }
 0x8fd   :  { %2814 = vrcp.f32 %v1050_v11 }
 0x909   :  { %v2813_v12 = vpop.eup %2812 }
 0x90a   :  { %v2815_v13 = vpop.eup %2814  ;;  %v956_v18 = vmul.f32 %v2813_v12, %v3076_v41 }
 0x90b   :  { %v1057_v19 = vmul.f32 %v2815_v13, %v1055_v17 }
 0x96a   :  { %v959_v10 = vpop.permute.xlu1 %958 }
 0x96b   :  { %v1060_v14 = vpop.permute.xlu0 %1059  ;;  %v961_v15 = vmul.f32 %v2813_v12, %v959_v10 }
 0x96c   :  { %v1062_v16 = vmul.f32 %v2815_v13, %v1060_v14 }
 0x96d   :  { %963 = vrot.lane.b32.xlu1 %v961_v15, %s2895_s3 }
 0x96e   :  { %1064 = vrot.lane.b32.xlu0 %v1062_v16, %s2895_s3 }
 0x9df   :  { %v964_v20 = vpop.permute.xlu1 %963 }
 0x9e0   :  { %v1065_v21 = vpop.permute.xlu0 %1064  ;;  %v3115_v22 = vadd.f32 %v964_v20, %v956_v18 }
 0x9e1   :  { %v3117_v25 = vadd.f32 %v1065_v21, %v1057_v19 }
 0x9e2   :  { %2816 = vtanh.f32 %v3115_v22 }
 0x9e3   :  { %2818 = vtanh.f32 %v3117_v25  ;;  %v1329_v60 = vrot.slane %v3117_v25, 6 }
 0x9ef   :  { %v2817_v26 = vpop.eup %2816 }
 0x9f0   :  { %v2819_v27 = vpop.eup %2818  ;;  %969 = vrot.lane.b32.xlu1 %v2817_v26, %s2896_s4 }
 0x9f1   :  { %1070 = vrot.lane.b32.xlu0 %v2819_v27, %s2896_s4 }
 0xa62   :  { %v970_v28 = vpop.permute.xlu1 %969 }
 0xa63   :  { %v1071_v29 = vpop.permute.xlu0 %1070  ;;  %v3123_v30 = vmul.f32 %v2813_v12, %v970_v28 }
 0xa64   :  { %v1073_v32 = vmul.f32 %v2815_v13, %v1071_v29 }
 0xa65   :  { %1075 = vrot.lane.b32.xlu0 %v3123_v30, %s2897_s5 }
 0xa66   :  { %v1150_v33 = vrot.slane %v1073_v32, 6 }
 0xa68   :  { %1151 = vrot.lane.b32.xlu1 %v1150_v33, %s2897_s5 }
 0xad7   :  { %v1076_v34 = vpop.permute.xlu0 %1075 }
 0xad8   :  { %2687 = vmatmul.mubr.msk.f32.vlgmr.msra.gmra.mxu1 %vm140_vm4, %v1076_v34 }
 0xad9   :  { %2695 = vmatpush3.msk.msra.mxu1 %vm144_vm2, %v2963_v4  ;;  %2696 = vmatprep.mubr.msk.f32.mxu1 %vm2893_vm3, %v2892_v3 }
 0xada   :  { %v1152_v35 = vpop.permute.xlu1 %1151  ;;  %2704 = vmatprep.subr.mxu1 %v2892_v3 }
 0xadb   :  { %2692 = vmatmul.mubr.msk.f32.vlgmr.msra.gmra.mxu0 %vm140_vm4, %v1152_v35 }
 0xadc   :  { %2697 = vmatmul.mubr.msk.f32.vlgmr.msra.gmra.mxu1 %vm140_vm4, %v1152_v35  ;;  %2700 = vmatpush3.msk.msra.mxu0 %vm144_vm2, %v2992_v23 }
 0xadd   :  { %2701 = vmatprep.mubr.msk.f32.mxu0 %vm2893_vm3, %v2892_v3  ;;  %2705 = vmatpush3.msk.msra.mxu1 %vm144_vm2, %v2997_v24 }
 0xade   :  { %2706 = vmatprep.mubr.msk.f32.mxu1 %vm2893_vm3, %v2892_v3  ;;  %2709 = vmatprep.subr.mxu0 %v2892_v3 }
 0xadf   :  { %2714 = vmatprep.subr.mxu1 %v2892_v3 }
 0xb98   :  { %v1145_v36 = vpop.f32.mrf.mxu1 }
 0xb9a   :  { %v2688_v37 = vpop.f32.mrf.mxu1 }
 0xb9b   :  { %v1221_v38 = vpop.f32.mrf.mxu0 }
 0xb9c   :  { %v1222_v39 = vadd.f32 %v1221_v38, %v1145_v36  ;;  %v1316_v40 = vpop.f32.mrf.mxu1 }
 0xb9d   :  { %v2693_v41 = vpop.f32.mrf.mxu0  ;;  %v1320_v42 = vadd.f32 %v1316_v40, %v2979_v7 }
 0xb9e   :  { %v1225_v43 = vadd.f32 %v3028_v31, %v1222_v39  ;;  %v2698_v44 = vpop.f32.mrf.mxu1 }
 0xb9f   :  { %2820 = vtanh.f32 %v1320_v42  ;;  %v2546_v48 = vmul.f32 -1.442695, %v1320_v42 }
 0xba0   :  { %2822 = vtanh.f32 %v1225_v43  ;;  %v2543_v49 = vmul.f32 -1.442695, %v1225_v43 }
 0xba1   :  { %2824 = vpow2.f32 %v2546_v48 }
 0xba2   :  { %2826 = vpow2.f32 %v2543_v49 }
 0xbac   :  { %v2821_v45 = vpop.eup %2820 }
 0xbad   :  { %v2823_v46 = vpop.eup %2822  ;;  %1333 = vrot.lane.b32.xlu1 %v2821_v45, %s2894_s2 }
 0xbae   :  { %1235 = vrot.lane.b32.xlu0 %v2823_v46, %s2894_s2  ;;  %v2825_v50 = vpop.eup %2824 }
 0xbaf   :  { %v2827_v51 = vpop.eup %2826  ;;  %v1324_v52 = vadd.f32 1.0, %v2825_v50 }
 0xbb0   :  { %v1229_v53 = vadd.f32 1.0, %v2827_v51 }
 0xbb1   :  { %2828 = vrcp.f32 %v1324_v52 }
 0xbb2   :  { %2830 = vrcp.f32 %v1229_v53 }
 0xbbe   :  { %v2829_v54 = vpop.eup %2828 }
 0xbbf   :  { %v2831_v56 = vpop.eup %2830  ;;  %v1331_v61 = vmul.f32 %v2829_v54, %v1329_v60 }
 0xbc0   :  { %v1233_v62 = vmul.f32 %v2831_v56, %v3115_v22 }
 0xc1f   :  { %v1334_v55 = vpop.permute.xlu1 %1333 }
 0xc20   :  { %v1236_v57 = vpop.permute.xlu0 %1235  ;;  %v1336_v58 = vmul.f32 %v2829_v54, %v1334_v55 }
 0xc21   :  { %v1238_v59 = vmul.f32 %v2831_v56, %v1236_v57 }
 0xc22   :  { %1338 = vrot.lane.b32.xlu1 %v1336_v58, %s2895_s3 }
 0xc23   :  { %1240 = vrot.lane.b32.xlu0 %v1238_v59, %s2895_s3 }
 0xc94   :  { %v1339_v63 = vpop.permute.xlu1 %1338 }
 0xc95   :  { %v1241_v0 = vpop.permute.xlu0 %1240  ;;  %v3154_v2 = vadd.f32 %v1339_v63, %v1331_v61 }
 0xc96   :  { %v1243_v5 = vadd.f32 %v1241_v0, %v1233_v62 }
 0xc97   :  { %2832 = vtanh.f32 %v3154_v2  ;;  %v1605_v45 = vrot.slane %v3154_v2, 6 }
 0xc98   :  { %2834 = vtanh.f32 %v1243_v5 }
 0xca4   :  { %v2833_v6 = vpop.eup %2832 }
 0xca5   :  { %v2835_v8 = vpop.eup %2834  ;;  %1344 = vrot.lane.b32.xlu1 %v2833_v6, %s2896_s4 }
 0xca6   :  { %1246 = vrot.lane.b32.xlu0 %v2835_v8, %s2896_s4 }
 0xd17   :  { %v1345_v9 = vpop.permute.xlu1 %1344 }
 0xd18   :  { %v1247_v11 = vpop.permute.xlu0 %1246  ;;  %v1347_v12 = vmul.f32 %v2829_v54, %v1345_v9 }
 0xd19   :  { %v3159_v10 = vmul.f32 %v2831_v56, %v1247_v11 }
 0xd1a   :  { %1424 = vrot.lane.b32.xlu1 %v1347_v12, %s2897_s5 }
 0xd1b   :  { %1349 = vrot.lane.b32.xlu0 %v3159_v10, %s2897_s5 }
 0xd8c   :  { %v1425_v13 = vpop.permute.xlu1 %1424 }
 0xd8d   :  { %v1350_v14 = vpop.permute.xlu0 %1349  ;;  %2707 = vmatmul.mubr.msk.f32.vlgmr.msra.gmra.mxu1 %vm140_vm4, %v1425_v13 }
 0xd8e   :  { %2702 = vmatmul.mubr.msk.f32.vlgmr.msra.gmra.mxu0 %vm140_vm4, %v1350_v14  ;;  %2715 = vmatpush3.msk.msra.mxu1 %vm144_vm2, %v2992_v23 }
 0xd8f   :  { %2710 = vmatpush3.msk.msra.mxu0 %vm144_vm2, %v2963_v4  ;;  %2711 = vmatprep.mubr.msk.f32.mxu0 %vm2893_vm3, %v2892_v3 }
 0xd90   :  { %2716 = vmatprep.mubr.msk.f32.mxu1 %vm2893_vm3, %v2892_v3  ;;  %2719 = vmatprep.subr.mxu0 %v2892_v3 }
 0xd91   :  { %2724 = vmatprep.subr.mxu1 %v2892_v3 }
 0xd92   :  { %2712 = vmatmul.mubr.msk.f32.vlgmr.msra.gmra.mxu0 %vm140_vm4, %v1425_v13 }
 0xd93   :  { %2720 = vmatpush3.msk.msra.mxu0 %vm144_vm2, %v2997_v24  ;;  %2721 = vmatprep.mubr.msk.f32.mxu0 %vm2893_vm3, %v2892_v3 }
 0xd94   :  { %2729 = vmatprep.subr.mxu0 %v2892_v3 }
 0xe4d   :  { %v1494_v15 = vpop.f32.mrf.mxu1 }
 0xe4e   :  { %v1419_v16 = vpop.f32.mrf.mxu0 }
 0xe4f   :  { %v1495_v17 = vadd.f32 %v1494_v15, %v1419_v16  ;;  %v2708_v18 = vpop.f32.mrf.mxu1 }
 0xe50   :  { %v2703_v19 = vpop.f32.mrf.mxu0 }
 0xe51   :  { %v1498_v20 = vadd.f32 %v3028_v31, %v1495_v17 }
 0xe52   :  { %v1589_v21 = vpop.f32.mrf.mxu0 }
 0xe53   :  { %2836 = vtanh.f32 %v1498_v20  ;;  %v1594_v22 = vrot.slane %v1589_v21, 6  ;;  %v2551_v29 = vmul.f32 -1.442695, %v1498_v20 }
 0xe54   :  { %v2713_v25 = vpop.f32.mrf.mxu0 }
 0xe55   :  { %v1596_v26 = vadd.f32 %v1594_v22, %v2979_v7 }
 0xe57   :  { %2838 = vtanh.f32 %v1596_v26  ;;  %v2554_v32 = vmul.f32 -1.442695, %v1596_v26 }
 0xe58   :  { %2840 = vpow2.f32 %v2551_v29 }
 0xe59   :  { %2842 = vpow2.f32 %v2554_v32 }
 0xe60   :  { %v2837_v27 = vpop.eup %2836 }
 0xe61   :  { %1508 = vrot.lane.b32.xlu0 %v2837_v27, %s2894_s2 }
 0xe64   :  { %v2839_v28 = vpop.eup %2838 }
 0xe65   :  { %1609 = vrot.lane.b32.xlu1 %v2839_v28, %s2894_s2  ;;  %v2841_v33 = vpop.eup %2840 }
 0xe66   :  { %v1502_v34 = vadd.f32 1.0, %v2841_v33  ;;  %v2843_v35 = vpop.eup %2842 }
 0xe67   :  { %v1600_v36 = vadd.f32 1.0, %v2843_v35 }
 0xe68   :  { %2844 = vrcp.f32 %v1502_v34 }
 0xe69   :  { %2846 = vrcp.f32 %v1600_v36 }
 0xe75   :  { %v2845_v37 = vpop.eup %2844 }
 0xe76   :  { %v2847_v40 = vpop.eup %2846  ;;  %v1506_v43 = vmul.f32 %v2845_v37, %v1243_v5 }
 0xe77   :  { %v1607_v48 = vmul.f32 %v2847_v40, %v1605_v45 }
 0xed3   :  { %v1509_v38 = vpop.permute.xlu0 %1508 }
 0xed4   :  { %v1511_v39 = vmul.f32 %v2845_v37, %v1509_v38 }
 0xed6   :  { %1513 = vrot.lane.b32.xlu0 %v1511_v39, %s2895_s3 }
 0xed7   :  { %v1610_v41 = vpop.permute.xlu1 %1609 }
 0xed8   :  { %v1612_v42 = vmul.f32 %v2847_v40, %v1610_v41 }
 0xeda   :  { %1614 = vrot.lane.b32.xlu1 %v1612_v42, %s2895_s3 }
 0xf48   :  { %v1514_v44 = vpop.permute.xlu0 %1513 }
 0xf49   :  { %v3189_v46 = vadd.f32 %v1514_v44, %v1506_v43 }
 0xf4b   :  { %2848 = vtanh.f32 %v3189_v46 }
 0xf4c   :  { %v1615_v49 = vpop.permute.xlu1 %1614 }
 0xf4d   :  { %v3192_v50 = vadd.f32 %v1615_v49, %v1607_v48 }
 0xf4f   :  { %2850 = vtanh.f32 %v3192_v50  ;;  %v1882_v27 = vrot.slane %v3192_v50, 6 }
 0xf58   :  { %v2849_v51 = vpop.eup %2848 }
 0xf59   :  { %1519 = vrot.lane.b32.xlu0 %v2849_v51, %s2896_s4 }
 0xf5c   :  { %v2851_v52 = vpop.eup %2850 }
 0xf5d   :  { %1620 = vrot.lane.b32.xlu1 %v2851_v52, %s2896_s4 }
 0xfcb   :  { %v1520_v53 = vpop.permute.xlu0 %1519 }
 0xfcc   :  { %v3197_v54 = vmul.f32 %v2845_v37, %v1520_v53 }
 0xfce   :  { %1625 = vrot.lane.b32.xlu0 %v3197_v54, %s2897_s5 }
 0xfcf   :  { %v1621_v55 = vpop.permute.xlu1 %1620 }
 0xfd0   :  { %v1623_v56 = vmul.f32 %v2847_v40, %v1621_v55 }
 0xfd2   :  { %v1700_v57 = vrot.slane %v1623_v56, 2 }
 0xfd4   :  { %1701 = vrot.lane.b32.xlu1 %v1700_v57, %s2897_s5 }
0x1040   :  { %v1626_v58 = vpop.permute.xlu0 %1625 }
0x1041   :  { %2717 = vmatmul.mubr.msk.f32.vlgmr.msra.gmra.mxu1 %vm140_vm4, %v1626_v58 }
0x1042   :  { %2725 = vmatpush3.msk.msra.mxu1 %vm144_vm2, %v2963_v4  ;;  %2726 = vmatprep.mubr.msk.f32.mxu1 %vm2893_vm3, %v2892_v3 }
0x1043   :  { %2734 = vmatprep.subr.mxu1 %v2892_v3 }
0x1046   :  { %v1702_v59 = vpop.permute.xlu1 %1701 }
0x1047   :  { %2722 = vmatmul.mubr.msk.f32.vlgmr.msra.gmra.mxu0 %vm140_vm4, %v1702_v59  ;;  %2727 = vmatmul.mubr.msk.f32.vlgmr.msra.gmra.mxu1 %vm140_vm4, %v1702_v59 }
0x1048   :  { %2730 = vmatpush3.msk.msra.mxu0 %vm144_vm2, %v2992_v23  ;;  %2731 = vmatprep.mubr.msk.f32.mxu0 %vm2893_vm3, %v2892_v3 }
0x1049   :  { %2739 = vmatprep.subr.mxu0 %v2892_v3  ;;  %2735 = vmatpush3.msk.msra.mxu1 %vm144_vm2, %v2997_v24 }
0x104a   :  { %2736 = vmatprep.mubr.msk.f32.mxu1 %vm2893_vm3, %v2892_v3  ;;  %2744 = vmatprep.subr.mxu1 %v2892_v3 }
0x1101   :  { %v1695_v60 = vpop.f32.mrf.mxu1 }
0x1103   :  { %v2718_v61 = vpop.f32.mrf.mxu1 }
0x1107   :  { %v1771_v62 = vpop.f32.mrf.mxu0  ;;  %v1866_v63 = vpop.f32.mrf.mxu1 }
0x1108   :  { %v1772_v0 = vadd.f32 %v1771_v62, %v1695_v60  ;;  %v1871_v2 = vrot.slane %v1866_v63, 4 }
0x1109   :  { %v2723_v5 = vpop.f32.mrf.mxu0  ;;  %v2728_v6 = vpop.f32.mrf.mxu1 }
0x110a   :  { %v1775_v8 = vadd.f32 %v3028_v31, %v1772_v0  ;;  %v1873_v9 = vadd.f32 %v1871_v2, %v2979_v7 }
0x110c   :  { %2852 = vtanh.f32 %v1775_v8  ;;  %v2559_v13 = vmul.f32 -1.442695, %v1775_v8  ;;  %v2562_v14 = vmul.f32 -1.442695, %v1873_v9 }
0x110d   :  { %2854 = vtanh.f32 %v1873_v9 }
0x110e   :  { %2856 = vpow2.f32 %v2559_v13 }
0x110f   :  { %2858 = vpow2.f32 %v2562_v14 }
0x1119   :  { %v2853_v11 = vpop.eup %2852 }
0x111a   :  { %v2855_v12 = vpop.eup %2854  ;;  %1785 = vrot.lane.b32.xlu0 %v2853_v11, %s2894_s2 }
0x111b   :  { %1886 = vrot.lane.b32.xlu1 %v2855_v12, %s2894_s2  ;;  %v2857_v15 = vpop.eup %2856 }
0x111c   :  { %v2859_v16 = vpop.eup %2858  ;;  %v1779_v17 = vadd.f32 1.0, %v2857_v15 }
0x111d   :  { %v1877_v18 = vadd.f32 1.0, %v2859_v16 }
0x111e   :  { %2860 = vrcp.f32 %v1779_v17 }
0x111f   :  { %2862 = vrcp.f32 %v1877_v18 }
0x112b   :  { %v2861_v19 = vpop.eup %2860 }
0x112c   :  { %v2863_v21 = vpop.eup %2862  ;;  %v1783_v28 = vmul.f32 %v2861_v19, %v3189_v46 }
0x112d   :  { %v1884_v32 = vmul.f32 %v2863_v21, %v1882_v27 }
0x118c   :  { %v1786_v20 = vpop.permute.xlu0 %1785 }
0x118d   :  { %v1788_v22 = vmul.f32 %v2861_v19, %v1786_v20  ;;  %v1887_v25 = vpop.permute.xlu1 %1886 }
0x118e   :  { %v1889_v26 = vmul.f32 %v2863_v21, %v1887_v25 }
0x118f   :  { %1790 = vrot.lane.b32.xlu0 %v1788_v22, %s2895_s3 }
0x1190   :  { %1891 = vrot.lane.b32.xlu1 %v1889_v26, %s2895_s3 }
0x1201   :  { %v1791_v29 = vpop.permute.xlu0 %1790 }
0x1202   :  { %v3228_v33 = vadd.f32 %v1791_v29, %v1783_v28  ;;  %v1892_v34 = vpop.permute.xlu1 %1891 }
0x1203   :  { %v3230_v35 = vadd.f32 %v1892_v34, %v1884_v32  ;;  %v2576_v34 = vld [vmem:[%s3313_s7] ss:$0 sm:$0xff] }
0x1204   :  { %2864 = vtanh.f32 %v3228_v33 }
0x1205   :  { %2866 = vtanh.f32 %v3230_v35  ;;  %v2159_v5 = vrot.slane %v3230_v35, 6 }
0x1211   :  { %v2865_v36 = vpop.eup %2864 }
0x1212   :  { %v2867_v37 = vpop.eup %2866  ;;  %1796 = vrot.lane.b32.xlu0 %v2865_v36, %s2896_s4 }
0x1213   :  { %1897 = vrot.lane.b32.xlu1 %v2867_v37, %s2896_s4 }
0x1284   :  { %v1797_v38 = vpop.permute.xlu0 %1796 }
0x1285   :  { %v3236_v39 = vmul.f32 %v2861_v19, %v1797_v38  ;;  %v1898_v40 = vpop.permute.xlu1 %1897 }
0x1286   :  { %v1900_v41 = vmul.f32 %v2863_v21, %v1898_v40 }
0x1287   :  { %1902 = vrot.lane.b32.xlu0 %v3236_v39, %s2897_s5 }
0x1288   :  { %v1977_v42 = vrot.slane %v1900_v41, 4 }
0x128a   :  { %1978 = vrot.lane.b32.xlu1 %v1977_v42, %s2897_s5 }
0x12f9   :  { %v1903_v43 = vpop.permute.xlu0 %1902 }
0x12fa   :  { %2732 = vmatmul.mubr.msk.f32.vlgmr.msra.gmra.mxu0 %vm140_vm4, %v1903_v43 }
0x12fb   :  { %2740 = vmatpush3.msk.msra.mxu0 %vm144_vm2, %v2963_v4  ;;  %2741 = vmatprep.mubr.msk.f32.mxu0 %vm2893_vm3, %v2892_v3 }
0x12fc   :  { %v1979_v44 = vpop.permute.xlu1 %1978  ;;  %2749 = vmatprep.subr.mxu0 %v2892_v3 }
0x12fd   :  { %2737 = vmatmul.mubr.msk.f32.vlgmr.msra.gmra.mxu1 %vm140_vm4, %v1979_v44 }
0x12fe   :  { %2742 = vmatmul.mubr.msk.f32.vlgmr.msra.gmra.mxu0 %vm140_vm4, %v1979_v44  ;;  %2745 = vmatpush3.msk.msra.mxu1 %vm144_vm2, %v2992_v23 }
0x12ff   :  { %2746 = vmatprep.mubr.msk.f32.mxu1 %vm2893_vm3, %v2892_v3  ;;  %2750 = vmatpush3.msk.msra.mxu0 %vm144_vm2, %v2997_v24 }
0x1300   :  { %2751 = vmatprep.mubr.msk.f32.mxu0 %vm2893_vm3, %v2892_v3 }
0x13ba   :  { %v1972_v4 = vpop.f32.mrf.mxu0 }
0x13bc   :  { %v2733_v45 = vpop.f32.mrf.mxu0 }
0x13bd   :  { %v2048_v46 = vpop.f32.mrf.mxu1 }
0x13be   :  { %v2049_v48 = vadd.f32 %v2048_v46, %v1972_v4  ;;  %v2143_v49 = vpop.f32.mrf.mxu0 }
0x13bf   :  { %v2738_v50 = vpop.f32.mrf.mxu1  ;;  %v2148_v51 = vrot.slane %v2143_v49, 2 }
0x13c0   :  { %v2052_v52 = vadd.f32 %v3028_v31, %v2049_v48  ;;  %v2743_v53 = vpop.f32.mrf.mxu0 }
0x13c1   :  { %v2150_v23 = vadd.f32 %v2148_v51, %v2979_v7 }
0x13c2   :  { %2868 = vtanh.f32 %v2052_v52  ;;  %v2567_v3 = vmul.f32 -1.442695, %v2052_v52 }
0x13c3   :  { %2870 = vtanh.f32 %v2150_v23  ;;  %v2570_v24 = vmul.f32 -1.442695, %v2150_v23  ;;  %v2899_v23 = vmov 0  }
0x13c4   :  { %2872 = vpow2.f32 %v2567_v3  ;;  %2762 = vset.pattern.permute.xlu1 %v2899_v23  ;;  %2763 = vset.pattern.permute.xlu0 %v2899_v23 }
0x13c5   :  { %2874 = vpow2.f32 %v2570_v24 }
0x13cf   :  { %v2869_v55 = vpop.eup %2868 }
0x13d0   :  { %v2871_v56 = vpop.eup %2870  ;;  %2062 = vrot.lane.b32.xlu1 %v2869_v55, %s2894_s2  ;;  %v14_v55 = vstv %s3314_s8 }
0x13d1   :  { %2163 = vrot.lane.b32.xlu0 %v2871_v56, %s2894_s2  ;;  %v2873_v57 = vpop.eup %2872  ;;  %15 = vst [vmem:[#allocation2] sm:$0x1] %v14_v55 }
0x13d2   :  { %v2875_v58 = vpop.eup %2874  ;;  %v2056_v59 = vadd.f32 1.0, %v2873_v57 }
0x13d3   :  { %v2154_v60 = vadd.f32 1.0, %v2875_v58 }
0x13d4   :  { %2876 = vrcp.f32 %v2056_v59 }
0x13d5   :  { %2878 = vrcp.f32 %v2154_v60 }
0x13e1   :  { %v2877_v61 = vpop.eup %2876 }
0x13e2   :  { %v2879_v62 = vpop.eup %2878  ;;  %v2060_v6 = vmul.f32 %v2877_v61, %v3228_v33 }
0x13e3   :  { %v2161_v9 = vmul.f32 %v2879_v62, %v2159_v5 }
0x1442   :  { %v2063_v7 = vpop.permute.xlu1 %2062 }
0x1443   :  { %v2065_v63 = vmul.f32 %v2877_v61, %v2063_v7  ;;  %v2164_v0 = vpop.permute.xlu0 %2163 }
0x1444   :  { %v2166_v2 = vmul.f32 %v2879_v62, %v2164_v0 }
0x1445   :  { %2067 = vrot.lane.b32.xlu1 %v2065_v63, %s2895_s3  ;;  %v2577_v63 = vld [vmem:[#allocation2] ss:$0 sm:$0xff] }
0x1446   :  { %2168 = vrot.lane.b32.xlu0 %v2166_v2, %s2895_s3 }
0x14b7   :  { %v2068_v8 = vpop.permute.xlu1 %2067 }
0x14b8   :  { %v2070_v11 = vadd.f32 %v2068_v8, %v2060_v6  ;;  %v2169_v12 = vpop.permute.xlu0 %2168 }
0x14b9   :  { %v2171_v13 = vadd.f32 %v2169_v12, %v2161_v9  ;;  %v2454_v9 = vlaneseq }
0x14ba   :  { %2880 = vtanh.f32 %v2070_v11 }
0x14bb   :  { %2882 = vtanh.f32 %v2171_v13  ;;  %v2455_v12 = vand.u32 127, %v2454_v9  ;;  %v2457_v13 = vshrl.u32 %v2454_v9, 7 }
0x14c7   :  { %v2881_v14 = vpop.eup %2880 }
0x14c8   :  { %v2883_v15 = vpop.eup %2882  ;;  %2073 = vrot.lane.b32.xlu1 %v2881_v14, %s2896_s4 }
0x14c9   :  { %2174 = vrot.lane.b32.xlu0 %v2883_v15, %s2896_s4  ;;  %v2458_v15 = vsub.s32 %v2455_v12, %v2457_v13 }
0x153a   :  { %v2074_v16 = vpop.permute.xlu1 %2073 }
0x153b   :  { %v2076_v17 = vmul.f32 %v2877_v61, %v2074_v16  ;;  %v2175_v18 = vpop.permute.xlu0 %2174 }
0x153c   :  { %v2177_v19 = vmul.f32 %v2879_v62, %v2175_v18 }
0x153d   :  { %2179 = vrot.lane.b32.xlu0 %v2076_v17, %s2897_s5 }
0x153e   :  { %v2254_v20 = vrot.slane %v2177_v19, 6 }
0x1540   :  { %2255 = vrot.lane.b32.xlu1 %v2254_v20, %s2897_s5 }
0x15af   :  { %v2180_v21 = vpop.permute.xlu0 %2179 }
0x15b0   :  { %2747 = vmatmul.mubr.msk.f32.vlgmr.msra.gmra.mxu1 %vm140_vm4, %v2180_v21 }
0x15b2   :  { %v2256_v22 = vpop.permute.xlu1 %2255 }
0x15b3   :  { %2752 = vmatmul.mubr.msk.f32.vlgmr.msra.gmra.mxu0 %vm140_vm4, %v2256_v22 }
0x1670   :  { %v2249_v25 = vpop.f32.mrf.mxu1 }
0x1672   :  { %v2748_v26 = vpop.f32.mrf.mxu1 }
0x1673   :  { %v2325_v27 = vpop.f32.mrf.mxu0 }
0x1674   :  { %v2326_v28 = vadd.f32 %v2325_v27, %v2249_v25 }
0x1675   :  { %v2753_v29 = vpop.f32.mrf.mxu0 }
0x1676   :  { %v2329_v32 = vadd.f32 %v3028_v31, %v2326_v28 }
0x1678   :  { %2884 = vtanh.f32 %v2329_v32  ;;  %v2575_v35 = vmul.f32 -1.442695, %v2329_v32 }
0x167a   :  { %2886 = vpow2.f32 %v2575_v35 }
0x1685   :  { %v2885_v33 = vpop.eup %2884 }
0x1686   :  { %2339 = vrot.lane.b32.xlu0 %v2885_v33, %s2894_s2 }
0x1687   :  { %v2887_v36 = vpop.eup %2886 }
0x1688   :  { %v2333_v37 = vadd.f32 1.0, %v2887_v36 }
0x168a   :  { %2360 = vrot.lane.b32.xlu0 %v2576_v34, %s2898_s24  ;;  %2888 = vrcp.f32 %v2333_v37 }
0x1697   :  { %v2889_v38 = vpop.eup %2888 }
0x1698   :  { %v2337_v45 = vmul.f32 %v2889_v38, %v2070_v11 }
0x16f8   :  { %v2340_v40 = vpop.permute.xlu0 %2339 }
0x16f9   :  { %v2342_v41 = vmul.f32 %v2889_v38, %v2340_v40 }
0x16fb   :  { %2344 = vrot.lane.b32.xlu1 %v2342_v41, %s2895_s3 }
0x16fc   :  { %v2361_v31 = vpop.permute.xlu0 %2360 }
0x16fd   :  { %v2363_v42 = vmul.f32 %v2361_v31, %v3045_v1  ;;  %v2365_v43 = vmul.f32 %v2361_v31, %v3123_v30  ;;  %v2367_v44 = vmul.f32 %v2361_v31, %v3197_v54  ;;  %v2369_v4 = vmul.f32 %v2361_v31, %v2076_v17 }
0x16fe   :  { %v2364_v54 = vmul.f32 %v2361_v31, %v3084_v47  ;;  %v2366_v52 = vmul.f32 %v2361_v31, %v3159_v10  ;;  %v2368_v53 = vmul.f32 %v2361_v31, %v3236_v39 }
0x16ff   :  { %2379 = vrot.lane.b32.xlu0 %v2363_v42, %s2897_s5 }
0x1703   :  { %2383 = vrot.lane.b32.xlu0 %v2365_v43, %s2897_s5 }
0x1707   :  { %2387 = vrot.lane.b32.xlu0 %v2367_v44, %s2897_s5 }
0x170b   :  { %2391 = vrot.lane.b32.xlu0 %v2369_v4, %s2897_s5 }
0x176d   :  { %v2345_v46 = vpop.permute.xlu1 %2344 }
0x176e   :  { %v2347_v48 = vadd.f32 %v2345_v46, %v2337_v45 }
0x1770   :  { %2890 = vtanh.f32 %v2347_v48 }
0x1771   :  { %v2380_v49 = vpop.permute.xlu0 %2379 }
0x1772   :  { %v2404_v1 = vsel %vm2403_vm5, %v2380_v49, 0.0 }
0x1773   :  { %2405 = vadd.xlane.f32.xlu0 %v2404_v1 }
0x1775   :  { %v2384_v50 = vpop.permute.xlu0 %2383 }
0x1776   :  { %v2410_v30 = vsel %vm2403_vm5, %v2384_v50, 0.0 }
0x1777   :  { %2411 = vadd.xlane.f32.xlu0 %v2410_v30 }
0x1779   :  { %v2388_v59 = vpop.permute.xlu0 %2387 }
0x177a   :  { %v2416_v61 = vsel %vm2403_vm5, %v2388_v59, 0.0 }
0x177d   :  { %v2891_v51 = vpop.eup %2890  ;;  %v2392_v7 = vpop.permute.xlu0 %2391 }
0x177e   :  { %2350 = vrot.lane.b32.xlu1 %v2891_v51, %s2896_s4  ;;  %v2422_v62 = vsel %vm2403_vm5, %v2392_v7, 0.0 }
0x1782   :  { %2381 = vrot.lane.b32.xlu1 %v2364_v54, %s2897_s5 }
0x1786   :  { %2385 = vrot.lane.b32.xlu1 %v2366_v52, %s2897_s5 }
0x178a   :  { %2389 = vrot.lane.b32.xlu1 %v2368_v53, %s2897_s5 }
0x17f0   :  { %v2351_v56 = vpop.permute.xlu1 %2350 }
0x17f1   :  { %v2353_v47 = vmul.f32 %v2889_v38, %v2351_v56 }
0x17f3   :  { %v2370_v3 = vmul.f32 %v2361_v31, %v2353_v47 }
0x17f4   :  { %v2382_v24 = vpop.permute.xlu1 %2381 }
0x17f5   :  { %2393 = vrot.lane.b32.xlu1 %v2370_v3, %s2897_s5  ;;  %v2407_v60 = vsel %vm2403_vm5, %v2382_v24, 0.0 }
0x17f8   :  { %v2386_v10 = vpop.permute.xlu1 %2385 }
0x17f9   :  { %v2413_v57 = vsel %vm2403_vm5, %v2386_v10, 0.0 }
0x17fa   :  { %2414 = vadd.xlane.f32.xlu0 %v2413_v57 }
0x17fc   :  { %v2390_v39 = vpop.permute.xlu1 %2389  ;;  %v2406_v11 = vpop.xlane.xlu0 %2405 }
0x17fd   :  { %v2419_v58 = vsel %vm2403_vm5, %v2390_v39, 0.0 }
0x17fe   :  { %2420 = vadd.xlane.f32.xlu0 %v2419_v58 }
0x1800   :  { %v2412_v18 = vpop.xlane.xlu0 %2411 }
0x1819   :  { %2408 = vadd.xlane.f32.xlu1 %v2407_v60 }
0x181d   :  { %2417 = vadd.xlane.f32.xlu1 %v2416_v61 }
0x1821   :  { %2423 = vadd.xlane.f32.xlu1 %v2422_v62 }
0x1832   :  { %2435 = vperm.xlu1 %2762, %v2577_v63  }
0x1867   :  { %v2394_v0 = vpop.permute.xlu1 %2393 }
0x1868   :  { %v2425_v2 = vsel %vm2403_vm5, %v2394_v0, 0.0 }
0x1869   :  { %2426 = vadd.xlane.f32.xlu0 %v2425_v2 }
0x1883   :  { %v2415_v22 = vpop.xlane.xlu0 %2414 }
0x1887   :  { %v2421_v33 = vpop.xlane.xlu0 %2420 }
0x18a2   :  { %v2409_v5 = vpop.xlane.xlu1 %2408 }
0x18a6   :  { %v2418_v6 = vpop.xlane.xlu1 %2417 }
0x18aa   :  { %v2424_v8 = vpop.xlane.xlu1 %2423 }
0x18ae   :  { %v2436_v14 = vpop.permute.xlu1 %2435 }
0x18af   :  { %v2438_v16 = vadd.f32 %v2436_v14, %v2406_v11  ;;  %v2439_v17 = vadd.f32 %v2436_v14, %v2409_v5  ;;  %v2440_v19 = vadd.f32 %v2436_v14, %v2412_v18  ;;  %v2441_v26 = vadd.f32 %v2436_v14, %v2415_v22 }
0x18b0   :  { %v2442_v28 = vadd.f32 %v2436_v14, %v2418_v6  ;;  %v2443_v34 = vadd.f32 %v2436_v14, %v2421_v33  ;;  %v2444_v37 = vadd.f32 %v2436_v14, %v2424_v8 }
0x18b1   :  { %v2459_v20 = vrot.slane %v2438_v16, %v2458_v15  ;;  %v2463_v21 = vrot.slane %v2439_v17, %v2458_v15  ;;  %v2467_v25 = vrot.slane %v2440_v19, %v2458_v15  ;;  %v2471_v32 = vrot.slane %v2441_v26, %v2458_v15 }
0x18b2   :  { %v2475_v36 = vrot.slane %v2442_v28, %v2458_v15  ;;  %v2479_v40 = vrot.slane %v2443_v34, %v2458_v15  ;;  %v2483_v43 = vrot.slane %v2444_v37, %v2458_v15 }
0x18b3   :  { %v2489_v27 = vsel %vm2488_vm6, %v2463_v21, %v2459_v20 }
0x18b4   :  { %v2491_v29 = vsel %vm2490_vm7, %v2467_v25, %v2489_v27 }
0x18b5   :  { %v2493_v35 = vsel %vm2492_vm8, %v2471_v32, %v2491_v29 }
0x18b6   :  { %v2495_v38 = vsel %vm2494_vm9, %v2475_v36, %v2493_v35 }
0x18b7   :  { %v2497_v42 = vsel %vm2496_vm10, %v2479_v40, %v2495_v38 }
0x18b8   :  { %v2499_v4 = vsel %vm2498_vm11, %v2483_v43, %v2497_v42 }
0x18f2   :  { %v2427_v41 = vpop.xlane.xlu0 %2426 }
0x18f3   :  { %v2445_v31 = vadd.f32 %v2436_v14, %v2427_v41 }
0x18f5   :  { %v2487_v44 = vrot.slane %v2445_v31, %v2458_v15 }
0x18f7   :  { %v2501_v45 = vsel %vm2500_vm12, %v2487_v44, %v2499_v4 }
0x18f8   :  { %2504 = vst.msk [vmem:[%s3315_s9] sm:$0xff] %vm2503_vm13, %v2501_v45 }

</bundles_post_ra>
